<compile_context>
chip_gen: v7x
topology: tpu7x:2x2x1
jax: 0.10.0
libtpu: 0.0.40
codegen_flags: <defaults>
</compile_context>

<pallas_src>
import math

import jax
import jax.numpy as jnp
from jax import lax
from jax.experimental import pallas as pl
from jax.experimental.pallas import tpu as pltpu

# ----------------------------- model dims ---------------------------------
B, S, D = 2, 8, 32          # batch, seq (context length), width
H, DH = 2, 16               # heads, head_dim
MLP = 4 * D                 # CLIP MLP expansion
PROJ = 16                   # text_projection output dim
PROJ_PAD = 128              # lane-dense padded projection width
N_LAYERS = 2                # transformer.resblocks
EPS = 1e-5                  # nn.LayerNorm default

# --- batch blocking: >=2 blocks when possible (v7x megacore), ~128 rows/blk
ROWS_TARGET = 128
B_BLK = max(1, min(max(B // 2, 1), ROWS_TARGET // S))
assert B % B_BLK == 0, "batch must divide evenly into blocks"
NB = B // B_BLK                                # grid size (parallel axis)
R = B_BLK * S                                  # activation rows per block
OUT_ROWS = max(8, ((B_BLK + 7) // 8) * 8)      # sublane-padded EOT rows/block


def _layernorm(x, g, b):
    mu = jnp.mean(x, axis=-1, keepdims=True)
    var = jnp.mean((x - mu) ** 2, axis=-1, keepdims=True)
    return (x - mu) * lax.rsqrt(var + EPS) * g + b


# ----------------------- the fused per-block kernel -------------------------
def fused_kernel(eot_ref,                                   # scalar prefetch (SMEM)
                 x_ref, pos_ref, mask_ref,
                 ln1_g, ln1_b, wqkv, bqkv, wo, bo,
                 ln2_g, ln2_b, w1, b1, w2, b2,
                 lnf_g, lnf_b, proj_ref,
                 o_ref):                                    # output
    # prompts + positional embedding (pos pre-tiled to (R, D) on host)
    x = x_ref[...] + pos_ref[...]                           # (R, D), f32
    neg = mask_ref[...]                                     # (R, R) host-built mask

    for l in range(N_LAYERS):                               # static unroll
        # --- multi-head self-attention (fused QKV, per-head accumulation) ---
        h = _layernorm(x, ln1_g[l], ln1_b[l])
        # 1/sqrt(DH) is folded into the Q columns of wqkv/bqkv at pack time.
        qkv = jnp.dot(h, wqkv[l], preferred_element_type=jnp.float32) + bqkv[l]
        wo_l = wo[l]                                         # (H*DH, D)
        attn = None
        for hd in range(H):                                  # static unroll
            q = qkv[:, hd * DH:(hd + 1) * DH]
            k = qkv[:, (H + hd) * DH:(H + hd + 1) * DH]
            v = qkv[:, (2 * H + hd) * DH:(2 * H + hd + 1) * DH]
            s = lax.dot_general(q, k, (((1,), (1,)), ((), ())),
                                preferred_element_type=jnp.float32) + neg
            m = jnp.max(s, axis=-1, keepdims=True)
            p = jnp.exp(s - m)
            denom = jnp.sum(p, axis=-1, keepdims=True)
            p = p * pl.reciprocal(denom, approx=True)        # divide on EUP
            pv = jnp.dot(p, v, preferred_element_type=jnp.float32)
            contrib = jnp.dot(pv, wo_l[hd * DH:(hd + 1) * DH, :],
                              preferred_element_type=jnp.float32)
            attn = contrib if attn is None else attn + contrib
        x = x + attn + bo[l]

        # --- MLP with QuickGELU (x * sigmoid(1.702 x)) ---
        h2 = _layernorm(x, ln2_g[l], ln2_b[l])
        m1 = jnp.dot(h2, w1[l], preferred_element_type=jnp.float32) + b1[l]
        m1 = m1 * jax.nn.sigmoid(1.702 * m1)
        x = x + jnp.dot(m1, w2[l], preferred_element_type=jnp.float32) + b2[l]

    # --- head: in-register one-hot EOT gather, LN those rows, project ---
    blk = pl.program_id(0)
    row_id = lax.broadcasted_iota(jnp.int32, (OUT_ROWS, R), 0)
    col_id = lax.broadcasted_iota(jnp.int32, (OUT_ROWS, R), 1)
    onehot = jnp.zeros((OUT_ROWS, R), jnp.float32)
    for b in range(B_BLK):                                   # static unroll, tiny
        tgt = b * S + eot_ref[blk * B_BLK + b]               # dynamic SMEM scalar
        onehot = onehot + jnp.where((row_id == b) & (col_id == tgt),
                                    jnp.float32(1.0), jnp.float32(0.0))
    rows_g = jnp.dot(onehot, x, preferred_element_type=jnp.float32)  # (OUT_ROWS, D)
    rows_ln = _layernorm(rows_g, lnf_g[...], lnf_b[...])
    o_ref[...] = jnp.dot(rows_ln, proj_ref[...],
                         preferred_element_type=jnp.float32).astype(o_ref.dtype)


def _const_spec(shape):
    nd = len(shape)
    return pl.BlockSpec(shape, lambda i, eot, nd=nd: (0,) * nd)


_ARG_KEYS = ("pos", "mask", "ln1_g", "ln1_b", "wqkv", "bqkv", "wo", "bo",
             "ln2_g", "ln2_b", "w1", "b1", "w2", "b2", "lnf_g", "lnf_b", "proj")


@jax.jit
def text_encoder_forward(prompts, tokenized_prompts, packed):
    eot = jnp.argmax(tokenized_prompts, axis=-1).astype(jnp.int32)   # (B,)
    x2d = prompts.reshape(B * S, D).astype(jnp.float32)
    args = [packed[k] for k in _ARG_KEYS]

    grid_spec = pltpu.PrefetchScalarGridSpec(
        num_scalar_prefetch=1,
        grid=(NB,),
        in_specs=[pl.BlockSpec((R, D), lambda i, eot: (i, 0))]
                 + [_const_spec(a.shape) for a in args],
        out_specs=pl.BlockSpec((OUT_ROWS, PROJ_PAD), lambda i, eot: (i, 0)),
    )
    out = pl.pallas_call(
        fused_kernel,
        out_shape=jax.ShapeDtypeStruct((NB * OUT_ROWS, PROJ_PAD), jnp.float32),
        grid_spec=grid_spec,
        compiler_params=pltpu.CompilerParams(dimension_semantics=("parallel",)),
    )(eot, x2d, *args)
    # drop sublane padding rows and lane padding columns
    return out.reshape(NB, OUT_ROWS, PROJ_PAD)[:, :B_BLK, :PROJ].reshape(B, PROJ)


# ------------------- pack per-layer/per-head params for the kernel ---------
def pack_params(p):
    scale = jnp.float32(1.0 / math.sqrt(DH))

    def cat_qkv(lp):                                         # fold 1/sqrt(DH) into Q
        parts = ([lp["wq"][h] * scale for h in range(H)]
                 + [lp["wk"][h] for h in range(H)]
                 + [lp["wv"][h] for h in range(H)])
        return jnp.concatenate(parts, axis=-1)               # (D, 3*H*DH)

    def cat_bqkv(lp):
        parts = ([lp["bq"][h] * scale for h in range(H)]
                 + [lp["bk"][h] for h in range(H)]
                 + [lp["bv"][h] for h in range(H)])
        return jnp.concatenate(parts, axis=-1)               # (1, 3*H*DH)

    def cat_wo(lp):
        return jnp.concatenate([lp["wo"][h] for h in range(H)], axis=0)  # (H*DH, D)

    # host-built block-diagonal-over-batch causal mask (static given B_BLK, S)
    r = jnp.arange(R)
    same_batch = (r[:, None] // S) == (r[None, :] // S)
    causal = r[None, :] <= r[:, None]
    mask = jnp.where(same_batch & causal, 0.0, -1e9).astype(jnp.float32)

    layers = p["layers"]
    return dict(
        pos=jnp.tile(p["pos"], (B_BLK, 1)),                  # (R, D) per block
        mask=mask,                                           # (R, R)
        ln1_g=jnp.stack([lp["ln1_g"] for lp in layers]),
        ln1_b=jnp.stack([lp["ln1_b"] for lp in layers]),
        wqkv=jnp.stack([cat_qkv(lp) for lp in layers]),
        bqkv=jnp.stack([cat_bqkv(lp) for lp in layers]),
        wo=jnp.stack([cat_wo(lp) for lp in layers]),
        bo=jnp.stack([lp["bo"] for lp in layers]),
        ln2_g=jnp.stack([lp["ln2_g"] for lp in layers]),
        ln2_b=jnp.stack([lp["ln2_b"] for lp in layers]),
        w1=jnp.stack([lp["w1"] for lp in layers]),
        b1=jnp.stack([lp["b1"] for lp in layers]),
        w2=jnp.stack([lp["w2"] for lp in layers]),
        b2=jnp.stack([lp["b2"] for lp in layers]),
        lnf_g=p["ln_final_g"], lnf_b=p["ln_final_b"],
        proj=jnp.pad(p["proj"], ((0, 0), (0, PROJ_PAD - PROJ))),  # lane-dense store
    )


# --------------------------- deterministic init ----------------------------
def init_params(key):
    keys = iter(jax.random.split(key, 128))

    def nrm(shape, scale=0.02):
        return (scale * jax.random.normal(next(keys), shape)).astype(jnp.float32)

    def ln_pair():
        g = (1.0 + 0.01 * jax.random.normal(next(keys), (1, D))).astype(jnp.float32)
        b = (0.01 * jax.random.normal(next(keys), (1, D))).astype(jnp.float32)
        return g, b

    lng, lnb = ln_pair()
    params = {"pos": nrm((S, D)), "ln_final_g": lng, "ln_final_b": lnb,
              "proj": nrm((D, PROJ)), "layers": []}
    for _ in range(N_LAYERS):
        g1, b1_ = ln_pair()
        g2, b2_ = ln_pair()
        lp = {"ln1_g": g1, "ln1_b": b1_,
              "wq": nrm((H, D, DH)), "bq": nrm((H, 1, DH)),
              "wk": nrm((H, D, DH)), "bk": nrm((H, 1, DH)),
              "wv": nrm((H, D, DH)), "bv": nrm((H, 1, DH)),
              "wo": nrm((H, DH, D)), "bo": nrm((1, D)),
              "ln2_g": g2, "ln2_b": b2_,
              "w1": nrm((D, MLP)), "b1": nrm((1, MLP)),
              "w2": nrm((MLP, D)), "b2": nrm((1, D))}
        params["layers"].append(lp)
    return params


# --------------------------- pure-JAX reference ----------------------------
def reference_forward(prompts, tok, p):
    x = prompts + p["pos"][None]
    rows = lax.broadcasted_iota(jnp.int32, (S, S), 0)
    cols = lax.broadcasted_iota(jnp.int32, (S, S), 1)
    mask = jnp.where(cols > rows, -1e9, 0.0).astype(jnp.float32)
    for lp in p["layers"]:
        h = _layernorm(x, lp["ln1_g"], lp["ln1_b"])
        attn = jnp.zeros_like(x)
        for hd in range(H):
            q = h @ lp["wq"][hd] + lp["bq"][hd]
            k = h @ lp["wk"][hd] + lp["bk"][hd]
            v = h @ lp["wv"][hd] + lp["bv"][hd]
            s = jnp.einsum("bqd,bkd->bqk", q, k) / jnp.sqrt(DH) + mask
            pm = jax.nn.softmax(s, axis=-1)
            attn = attn + jnp.einsum("bqk,bkd->bqd", pm, v) @ lp["wo"][hd]
        x = x + attn + lp["bo"]
        h2 = _layernorm(x, lp["ln2_g"], lp["ln2_b"])
        m = h2 @ lp["w1"] + lp["b1"]
        m = m * jax.nn.sigmoid(1.702 * m)
        x = x + m @ lp["w2"] + lp["b2"]
    x = _layernorm(x, p["ln_final_g"], p["ln_final_b"])
    eot = jnp.argmax(tok, axis=-1)
    return x[jnp.arange(B), eot] @ p["proj"]


if __name__ == "__main__":
    key = jax.random.PRNGKey(0)
    kp, kprompt, ktok = jax.random.split(key, 3)
    params = init_params(kp)
    packed = pack_params(params)

    prompts = 0.1 * jax.random.normal(kprompt, (B, S, D), jnp.float32)
    tokenized_prompts = jax.random.randint(ktok, (B, S), 1, 100, dtype=jnp.int32)
    # emulate CLIP's EOT token having the largest id at a known position
    tokenized_prompts = tokenized_prompts.at[0, 5].set(1000).at[1, 7].set(1000)

    out = text_encoder_forward(prompts, tokenized_prompts, packed)
    out = jax.block_until_ready(out)

    ref = reference_forward(prompts, tokenized_prompts, params)
    assert out.shape == (B, PROJ), out.shape
    assert jnp.allclose(out, ref, rtol=2e-2, atol=2e-2), (out, ref)
    print("KERNEL_OK")
</pallas_src>

<mosaic_0001>
module attributes {stable_mosaic.version = 11 : i64} {
  func.func @fused_kernel(%arg0: i32, %arg1: memref<2xi32, #tpu.memory_space<smem>>, %arg2: memref<8x32xf32, #tpu.memory_space<vmem>>, %arg3: memref<8x32xf32, #tpu.memory_space<vmem>>, %arg4: memref<8x8xf32, #tpu.memory_space<vmem>>, %arg5: memref<2x1x32xf32, #tpu.memory_space<vmem>>, %arg6: memref<2x1x32xf32, #tpu.memory_space<vmem>>, %arg7: memref<2x32x96xf32, #tpu.memory_space<vmem>>, %arg8: memref<2x1x96xf32, #tpu.memory_space<vmem>>, %arg9: memref<2x32x32xf32, #tpu.memory_space<vmem>>, %arg10: memref<2x1x32xf32, #tpu.memory_space<vmem>>, %arg11: memref<2x1x32xf32, #tpu.memory_space<vmem>>, %arg12: memref<2x1x32xf32, #tpu.memory_space<vmem>>, %arg13: memref<2x32x128xf32, #tpu.memory_space<vmem>>, %arg14: memref<2x1x128xf32, #tpu.memory_space<vmem>>, %arg15: memref<2x128x32xf32, #tpu.memory_space<vmem>>, %arg16: memref<2x1x32xf32, #tpu.memory_space<vmem>>, %arg17: memref<1x32xf32, #tpu.memory_space<vmem>>, %arg18: memref<1x32xf32, #tpu.memory_space<vmem>>, %arg19: memref<32x128xf32, #tpu.memory_space<vmem>>, %arg20: memref<8x128xf32, #tpu.memory_space<vmem>>) attributes {dimension_semantics = [#tpu.dimension_semantics<parallel>], iteration_bounds = array<i64: 2>, scalar_prefetch = 1 : i64, scratch_operands = 0 : i64, tpu.core_type = #tpu.core_type<tc>, window_params = [{transform_indices = @transform_0, window_bounds = array<i64: 8, 32>}, {pipeline_mode = #tpu.pipeline_mode<synchronous>, transform_indices = @transform_1, window_bounds = array<i64: 8, 32>}, {pipeline_mode = #tpu.pipeline_mode<synchronous>, transform_indices = @transform_2, window_bounds = array<i64: 8, 8>}, {pipeline_mode = #tpu.pipeline_mode<synchronous>, transform_indices = @transform_3, window_bounds = array<i64: 2, 1, 32>}, {pipeline_mode = #tpu.pipeline_mode<synchronous>, transform_indices = @transform_4, window_bounds = array<i64: 2, 1, 32>}, {pipeline_mode = #tpu.pipeline_mode<synchronous>, transform_indices = @transform_5, window_bounds = array<i64: 2, 32, 96>}, {pipeline_mode = #tpu.pipeline_mode<synchronous>, transform_indices = @transform_6, window_bounds = array<i64: 2, 1, 96>}, {pipeline_mode = #tpu.pipeline_mode<synchronous>, transform_indices = @transform_7, window_bounds = array<i64: 2, 32, 32>}, {pipeline_mode = #tpu.pipeline_mode<synchronous>, transform_indices = @transform_8, window_bounds = array<i64: 2, 1, 32>}, {pipeline_mode = #tpu.pipeline_mode<synchronous>, transform_indices = @transform_9, window_bounds = array<i64: 2, 1, 32>}, {pipeline_mode = #tpu.pipeline_mode<synchronous>, transform_indices = @transform_10, window_bounds = array<i64: 2, 1, 32>}, {pipeline_mode = #tpu.pipeline_mode<synchronous>, transform_indices = @transform_11, window_bounds = array<i64: 2, 32, 128>}, {pipeline_mode = #tpu.pipeline_mode<synchronous>, transform_indices = @transform_12, window_bounds = array<i64: 2, 1, 128>}, {pipeline_mode = #tpu.pipeline_mode<synchronous>, transform_indices = @transform_13, window_bounds = array<i64: 2, 128, 32>}, {pipeline_mode = #tpu.pipeline_mode<synchronous>, transform_indices = @transform_14, window_bounds = array<i64: 2, 1, 32>}, {pipeline_mode = #tpu.pipeline_mode<synchronous>, transform_indices = @transform_15, window_bounds = array<i64: 1, 32>}, {pipeline_mode = #tpu.pipeline_mode<synchronous>, transform_indices = @transform_16, window_bounds = array<i64: 1, 32>}, {pipeline_mode = #tpu.pipeline_mode<synchronous>, transform_indices = @transform_17, window_bounds = array<i64: 32, 128>}, {transform_indices = @transform_18, window_bounds = array<i64: 8, 128>}]} {
    %c0 = arith.constant 0 : index
    %c0_0 = arith.constant 0 : index
    %0 = vector.load %arg2[%c0, %c0_0] : memref<8x32xf32, #tpu.memory_space<vmem>>, vector<8x32xf32>
    %c0_1 = arith.constant 0 : index
    %c0_2 = arith.constant 0 : index
    %1 = vector.load %arg3[%c0_1, %c0_2] : memref<8x32xf32, #tpu.memory_space<vmem>>, vector<8x32xf32>
    %2 = arith.addf %0, %1 : vector<8x32xf32>
    %c0_3 = arith.constant 0 : index
    %c0_4 = arith.constant 0 : index
    %3 = vector.load %arg4[%c0_3, %c0_4] : memref<8x8xf32, #tpu.memory_space<vmem>>, vector<8x8xf32>
    %c0_5 = arith.constant 0 : index
    %c0_6 = arith.constant 0 : index
    %c0_7 = arith.constant 0 : index
    %4 = vector.load %arg5[%c0_5, %c0_6, %c0_7] : memref<2x1x32xf32, #tpu.memory_space<vmem>>, vector<1x1x32xf32>
    %5 = vector.shape_cast %4 : vector<1x1x32xf32> to vector<1x32xf32>
    %c0_8 = arith.constant 0 : index
    %c0_9 = arith.constant 0 : index
    %c0_10 = arith.constant 0 : index
    %6 = vector.load %arg6[%c0_8, %c0_9, %c0_10] : memref<2x1x32xf32, #tpu.memory_space<vmem>>, vector<1x1x32xf32>
    %7 = vector.shape_cast %6 : vector<1x1x32xf32> to vector<1x32xf32>
    %cst = arith.constant dense<0.000000e+00> : vector<8xf32>
    %8 = vector.multi_reduction <add>, %2, %cst [1] : vector<8x32xf32> to vector<8xf32>
    %9 = vector.shape_cast %8 : vector<8xf32> to vector<8x1xf32>
    %cst_11 = arith.constant 3.200000e+01 : f32
    %10 = vector.broadcast %cst_11 : f32 to vector<8x1xf32>
    %11 = arith.divf %9, %10 : vector<8x1xf32>
    %12 = vector.broadcast %11 : vector<8x1xf32> to vector<8x32xf32>
    %13 = arith.subf %2, %12 : vector<8x32xf32>
    %14 = arith.mulf %13, %13 : vector<8x32xf32>
    %cst_12 = arith.constant dense<0.000000e+00> : vector<8xf32>
    %15 = vector.multi_reduction <add>, %14, %cst_12 [1] : vector<8x32xf32> to vector<8xf32>
    %16 = vector.shape_cast %15 : vector<8xf32> to vector<8x1xf32>
    %cst_13 = arith.constant 3.200000e+01 : f32
    %17 = vector.broadcast %cst_13 : f32 to vector<8x1xf32>
    %18 = arith.divf %16, %17 : vector<8x1xf32>
    %19 = vector.broadcast %11 : vector<8x1xf32> to vector<8x32xf32>
    %20 = arith.subf %2, %19 : vector<8x32xf32>
    %cst_14 = arith.constant 9.99999974E-6 : f32
    %21 = vector.broadcast %cst_14 : f32 to vector<8x1xf32>
    %22 = arith.addf %18, %21 : vector<8x1xf32>
    %23 = math.rsqrt %22 : vector<8x1xf32>
    %24 = vector.broadcast %23 : vector<8x1xf32> to vector<8x32xf32>
    %25 = arith.mulf %20, %24 : vector<8x32xf32>
    %26 = vector.broadcast %5 : vector<1x32xf32> to vector<8x32xf32>
    %27 = arith.mulf %25, %26 : vector<8x32xf32>
    %28 = vector.broadcast %7 : vector<1x32xf32> to vector<8x32xf32>
    %29 = arith.addf %27, %28 : vector<8x32xf32>
    %c0_15 = arith.constant 0 : index
    %c0_16 = arith.constant 0 : index
    %c0_17 = arith.constant 0 : index
    %30 = vector.load %arg7[%c0_15, %c0_16, %c0_17] : memref<2x32x96xf32, #tpu.memory_space<vmem>>, vector<1x32x96xf32>
    %31 = vector.shape_cast %30 : vector<1x32x96xf32> to vector<32x96xf32>
    %cst_18 = arith.constant dense<0.000000e+00> : vector<8x96xf32>
    %32 = tpu.matmul %29, %31, %cst_18 {dimension_numbers = #tpu.dot_dimension_numbers<[1], [0], [0], [1], [0, 0, 1, 1], [], []>} : vector<8x32xf32>, vector<32x96xf32>, vector<8x96xf32> -> vector<8x96xf32>
    %c0_19 = arith.constant 0 : index
    %c0_20 = arith.constant 0 : index
    %c0_21 = arith.constant 0 : index
    %33 = vector.load %arg8[%c0_19, %c0_20, %c0_21] : memref<2x1x96xf32, #tpu.memory_space<vmem>>, vector<1x1x96xf32>
    %34 = vector.shape_cast %33 : vector<1x1x96xf32> to vector<1x96xf32>
    %35 = vector.broadcast %34 : vector<1x96xf32> to vector<8x96xf32>
    %36 = arith.addf %32, %35 : vector<8x96xf32>
    %c0_22 = arith.constant 0 : index
    %c0_23 = arith.constant 0 : index
    %c0_24 = arith.constant 0 : index
    %37 = vector.load %arg9[%c0_22, %c0_23, %c0_24] : memref<2x32x32xf32, #tpu.memory_space<vmem>>, vector<1x32x32xf32>
    %38 = vector.shape_cast %37 : vector<1x32x32xf32> to vector<32x32xf32>
    %39 = vector.extract_strided_slice %36 {offsets = [0, 0], sizes = [8, 16], strides = [1, 1]} : vector<8x96xf32> to vector<8x16xf32>
    %40 = vector.extract_strided_slice %36 {offsets = [0, 32], sizes = [8, 16], strides = [1, 1]} : vector<8x96xf32> to vector<8x16xf32>
    %41 = vector.extract_strided_slice %36 {offsets = [0, 64], sizes = [8, 16], strides = [1, 1]} : vector<8x96xf32> to vector<8x16xf32>
    %cst_25 = arith.constant dense<0.000000e+00> : vector<8x8xf32>
    %42 = tpu.matmul %39, %40, %cst_25 {dimension_numbers = #tpu.dot_dimension_numbers<[1], [1], [0], [0], [0, 0, 1, 0], [], []>} : vector<8x16xf32>, vector<8x16xf32>, vector<8x8xf32> -> vector<8x8xf32>
    %43 = arith.addf %42, %3 : vector<8x8xf32>
    %cst_26 = arith.constant dense<0xFF800000> : vector<8xf32>
    %44 = vector.multi_reduction <maximumf>, %43, %cst_26 [1] : vector<8x8xf32> to vector<8xf32>
    %45 = vector.shape_cast %44 : vector<8xf32> to vector<8x1xf32>
    %46 = vector.broadcast %45 : vector<8x1xf32> to vector<8x8xf32>
    %47 = arith.subf %43, %46 : vector<8x8xf32>
    %48 = math.exp %47 : vector<8x8xf32>
    %cst_27 = arith.constant dense<0.000000e+00> : vector<8xf32>
    %49 = vector.multi_reduction <add>, %48, %cst_27 [1] : vector<8x8xf32> to vector<8xf32>
    %50 = vector.shape_cast %49 : vector<8xf32> to vector<8x1xf32>
    %51 = tpu.reciprocal %50 {approx = true} : vector<8x1xf32> -> vector<8x1xf32>
    %52 = vector.broadcast %51 : vector<8x1xf32> to vector<8x8xf32>
    %53 = arith.mulf %48, %52 : vector<8x8xf32>
    %cst_28 = arith.constant dense<0.000000e+00> : vector<8x16xf32>
    %54 = tpu.matmul %53, %41, %cst_28 {dimension_numbers = #tpu.dot_dimension_numbers<[1], [0], [0], [1], [0, 0, 1, 1], [], []>} : vector<8x8xf32>, vector<8x16xf32>, vector<8x16xf32> -> vector<8x16xf32>
    %55 = vector.extract_strided_slice %38 {offsets = [0, 0], sizes = [16, 32], strides = [1, 1]} : vector<32x32xf32> to vector<16x32xf32>
    %cst_29 = arith.constant dense<0.000000e+00> : vector<8x32xf32>
    %56 = tpu.matmul %54, %55, %cst_29 {dimension_numbers = #tpu.dot_dimension_numbers<[1], [0], [0], [1], [0, 0, 1, 1], [], []>} : vector<8x16xf32>, vector<16x32xf32>, vector<8x32xf32> -> vector<8x32xf32>
    %57 = vector.extract_strided_slice %36 {offsets = [0, 16], sizes = [8, 16], strides = [1, 1]} : vector<8x96xf32> to vector<8x16xf32>
    %58 = vector.extract_strided_slice %36 {offsets = [0, 48], sizes = [8, 16], strides = [1, 1]} : vector<8x96xf32> to vector<8x16xf32>
    %59 = vector.extract_strided_slice %36 {offsets = [0, 80], sizes = [8, 16], strides = [1, 1]} : vector<8x96xf32> to vector<8x16xf32>
    %cst_30 = arith.constant dense<0.000000e+00> : vector<8x8xf32>
    %60 = tpu.matmul %57, %58, %cst_30 {dimension_numbers = #tpu.dot_dimension_numbers<[1], [1], [0], [0], [0, 0, 1, 0], [], []>} : vector<8x16xf32>, vector<8x16xf32>, vector<8x8xf32> -> vector<8x8xf32>
    %61 = arith.addf %60, %3 : vector<8x8xf32>
    %cst_31 = arith.constant dense<0xFF800000> : vector<8xf32>
    %62 = vector.multi_reduction <maximumf>, %61, %cst_31 [1] : vector<8x8xf32> to vector<8xf32>
    %63 = vector.shape_cast %62 : vector<8xf32> to vector<8x1xf32>
    %64 = vector.broadcast %63 : vector<8x1xf32> to vector<8x8xf32>
    %65 = arith.subf %61, %64 : vector<8x8xf32>
    %66 = math.exp %65 : vector<8x8xf32>
    %cst_32 = arith.constant dense<0.000000e+00> : vector<8xf32>
    %67 = vector.multi_reduction <add>, %66, %cst_32 [1] : vector<8x8xf32> to vector<8xf32>
    %68 = vector.shape_cast %67 : vector<8xf32> to vector<8x1xf32>
    %69 = tpu.reciprocal %68 {approx = true} : vector<8x1xf32> -> vector<8x1xf32>
    %70 = vector.broadcast %69 : vector<8x1xf32> to vector<8x8xf32>
    %71 = arith.mulf %66, %70 : vector<8x8xf32>
    %cst_33 = arith.constant dense<0.000000e+00> : vector<8x16xf32>
    %72 = tpu.matmul %71, %59, %cst_33 {dimension_numbers = #tpu.dot_dimension_numbers<[1], [0], [0], [1], [0, 0, 1, 1], [], []>} : vector<8x8xf32>, vector<8x16xf32>, vector<8x16xf32> -> vector<8x16xf32>
    %73 = vector.extract_strided_slice %38 {offsets = [16, 0], sizes = [16, 32], strides = [1, 1]} : vector<32x32xf32> to vector<16x32xf32>
    %cst_34 = arith.constant dense<0.000000e+00> : vector<8x32xf32>
    %74 = tpu.matmul %72, %73, %cst_34 {dimension_numbers = #tpu.dot_dimension_numbers<[1], [0], [0], [1], [0, 0, 1, 1], [], []>} : vector<8x16xf32>, vector<16x32xf32>, vector<8x32xf32> -> vector<8x32xf32>
    %75 = arith.addf %56, %74 : vector<8x32xf32>
    %76 = arith.addf %2, %75 : vector<8x32xf32>
    %c0_35 = arith.constant 0 : index
    %c0_36 = arith.constant 0 : index
    %c0_37 = arith.constant 0 : index
    %77 = vector.load %arg10[%c0_35, %c0_36, %c0_37] : memref<2x1x32xf32, #tpu.memory_space<vmem>>, vector<1x1x32xf32>
    %78 = vector.shape_cast %77 : vector<1x1x32xf32> to vector<1x32xf32>
    %79 = vector.broadcast %78 : vector<1x32xf32> to vector<8x32xf32>
    %80 = arith.addf %76, %79 : vector<8x32xf32>
    %c0_38 = arith.constant 0 : index
    %c0_39 = arith.constant 0 : index
    %c0_40 = arith.constant 0 : index
    %81 = vector.load %arg11[%c0_38, %c0_39, %c0_40] : memref<2x1x32xf32, #tpu.memory_space<vmem>>, vector<1x1x32xf32>
    %82 = vector.shape_cast %81 : vector<1x1x32xf32> to vector<1x32xf32>
    %c0_41 = arith.constant 0 : index
    %c0_42 = arith.constant 0 : index
    %c0_43 = arith.constant 0 : index
    %83 = vector.load %arg12[%c0_41, %c0_42, %c0_43] : memref<2x1x32xf32, #tpu.memory_space<vmem>>, vector<1x1x32xf32>
    %84 = vector.shape_cast %83 : vector<1x1x32xf32> to vector<1x32xf32>
    %cst_44 = arith.constant dense<0.000000e+00> : vector<8xf32>
    %85 = vector.multi_reduction <add>, %80, %cst_44 [1] : vector<8x32xf32> to vector<8xf32>
    %86 = vector.shape_cast %85 : vector<8xf32> to vector<8x1xf32>
    %cst_45 = arith.constant 3.200000e+01 : f32
    %87 = vector.broadcast %cst_45 : f32 to vector<8x1xf32>
    %88 = arith.divf %86, %87 : vector<8x1xf32>
    %89 = vector.broadcast %88 : vector<8x1xf32> to vector<8x32xf32>
    %90 = arith.subf %80, %89 : vector<8x32xf32>
    %91 = arith.mulf %90, %90 : vector<8x32xf32>
    %cst_46 = arith.constant dense<0.000000e+00> : vector<8xf32>
    %92 = vector.multi_reduction <add>, %91, %cst_46 [1] : vector<8x32xf32> to vector<8xf32>
    %93 = vector.shape_cast %92 : vector<8xf32> to vector<8x1xf32>
    %cst_47 = arith.constant 3.200000e+01 : f32
    %94 = vector.broadcast %cst_47 : f32 to vector<8x1xf32>
    %95 = arith.divf %93, %94 : vector<8x1xf32>
    %96 = vector.broadcast %88 : vector<8x1xf32> to vector<8x32xf32>
    %97 = arith.subf %80, %96 : vector<8x32xf32>
    %cst_48 = arith.constant 9.99999974E-6 : f32
    %98 = vector.broadcast %cst_48 : f32 to vector<8x1xf32>
    %99 = arith.addf %95, %98 : vector<8x1xf32>
    %100 = math.rsqrt %99 : vector<8x1xf32>
    %101 = vector.broadcast %100 : vector<8x1xf32> to vector<8x32xf32>
    %102 = arith.mulf %97, %101 : vector<8x32xf32>
    %103 = vector.broadcast %82 : vector<1x32xf32> to vector<8x32xf32>
    %104 = arith.mulf %102, %103 : vector<8x32xf32>
    %105 = vector.broadcast %84 : vector<1x32xf32> to vector<8x32xf32>
    %106 = arith.addf %104, %105 : vector<8x32xf32>
    %c0_49 = arith.constant 0 : index
    %c0_50 = arith.constant 0 : index
    %c0_51 = arith.constant 0 : index
    %107 = vector.load %arg13[%c0_49, %c0_50, %c0_51] : memref<2x32x128xf32, #tpu.memory_space<vmem>>, vector<1x32x128xf32>
    %108 = vector.shape_cast %107 : vector<1x32x128xf32> to vector<32x128xf32>
    %cst_52 = arith.constant dense<0.000000e+00> : vector<8x128xf32>
    %109 = tpu.matmul %106, %108, %cst_52 {dimension_numbers = #tpu.dot_dimension_numbers<[1], [0], [0], [1], [0, 0, 1, 1], [], []>} : vector<8x32xf32>, vector<32x128xf32>, vector<8x128xf32> -> vector<8x128xf32>
    %c0_53 = arith.constant 0 : index
    %c0_54 = arith.constant 0 : index
    %c0_55 = arith.constant 0 : index
    %110 = vector.load %arg14[%c0_53, %c0_54, %c0_55] : memref<2x1x128xf32, #tpu.memory_space<vmem>>, vector<1x1x128xf32>
    %111 = vector.shape_cast %110 : vector<1x1x128xf32> to vector<1x128xf32>
    %112 = vector.broadcast %111 : vector<1x128xf32> to vector<8x128xf32>
    %113 = arith.addf %109, %112 : vector<8x128xf32>
    %cst_56 = arith.constant 1.702000e+00 : f32
    %114 = vector.broadcast %cst_56 : f32 to vector<8x128xf32>
    %115 = arith.mulf %114, %113 : vector<8x128xf32>
    %116 = arith.negf %115 : vector<8x128xf32>
    %117 = math.exp %116 : vector<8x128xf32>
    %cst_57 = arith.constant 1.000000e+00 : f32
    %118 = vector.broadcast %cst_57 : f32 to vector<8x128xf32>
    %119 = arith.addf %118, %117 : vector<8x128xf32>
    %120 = arith.divf %118, %119 : vector<8x128xf32>
    %121 = arith.mulf %113, %120 : vector<8x128xf32>
    %c0_58 = arith.constant 0 : index
    %c0_59 = arith.constant 0 : index
    %c0_60 = arith.constant 0 : index
    %122 = vector.load %arg15[%c0_58, %c0_59, %c0_60] : memref<2x128x32xf32, #tpu.memory_space<vmem>>, vector<1x128x32xf32>
    %123 = vector.shape_cast %122 : vector<1x128x32xf32> to vector<128x32xf32>
    %cst_61 = arith.constant dense<0.000000e+00> : vector<8x32xf32>
    %124 = tpu.matmul %121, %123, %cst_61 {dimension_numbers = #tpu.dot_dimension_numbers<[1], [0], [0], [1], [0, 0, 1, 1], [], []>} : vector<8x128xf32>, vector<128x32xf32>, vector<8x32xf32> -> vector<8x32xf32>
    %125 = arith.addf %80, %124 : vector<8x32xf32>
    %c0_62 = arith.constant 0 : index
    %c0_63 = arith.constant 0 : index
    %c0_64 = arith.constant 0 : index
    %126 = vector.load %arg16[%c0_62, %c0_63, %c0_64] : memref<2x1x32xf32, #tpu.memory_space<vmem>>, vector<1x1x32xf32>
    %127 = vector.shape_cast %126 : vector<1x1x32xf32> to vector<1x32xf32>
    %128 = vector.broadcast %127 : vector<1x32xf32> to vector<8x32xf32>
    %129 = arith.addf %125, %128 : vector<8x32xf32>
    %c1 = arith.constant 1 : index
    %c0_65 = arith.constant 0 : index
    %c0_66 = arith.constant 0 : index
    %130 = vector.load %arg5[%c1, %c0_65, %c0_66] : memref<2x1x32xf32, #tpu.memory_space<vmem>>, vector<1x1x32xf32>
    %131 = vector.shape_cast %130 : vector<1x1x32xf32> to vector<1x32xf32>
    %c1_67 = arith.constant 1 : index
    %c0_68 = arith.constant 0 : index
    %c0_69 = arith.constant 0 : index
    %132 = vector.load %arg6[%c1_67, %c0_68, %c0_69] : memref<2x1x32xf32, #tpu.memory_space<vmem>>, vector<1x1x32xf32>
    %133 = vector.shape_cast %132 : vector<1x1x32xf32> to vector<1x32xf32>
    %cst_70 = arith.constant dense<0.000000e+00> : vector<8xf32>
    %134 = vector.multi_reduction <add>, %129, %cst_70 [1] : vector<8x32xf32> to vector<8xf32>
    %135 = vector.shape_cast %134 : vector<8xf32> to vector<8x1xf32>
    %cst_71 = arith.constant 3.200000e+01 : f32
    %136 = vector.broadcast %cst_71 : f32 to vector<8x1xf32>
    %137 = arith.divf %135, %136 : vector<8x1xf32>
    %138 = vector.broadcast %137 : vector<8x1xf32> to vector<8x32xf32>
    %139 = arith.subf %129, %138 : vector<8x32xf32>
    %140 = arith.mulf %139, %139 : vector<8x32xf32>
    %cst_72 = arith.constant dense<0.000000e+00> : vector<8xf32>
    %141 = vector.multi_reduction <add>, %140, %cst_72 [1] : vector<8x32xf32> to vector<8xf32>
    %142 = vector.shape_cast %141 : vector<8xf32> to vector<8x1xf32>
    %cst_73 = arith.constant 3.200000e+01 : f32
    %143 = vector.broadcast %cst_73 : f32 to vector<8x1xf32>
    %144 = arith.divf %142, %143 : vector<8x1xf32>
    %145 = vector.broadcast %137 : vector<8x1xf32> to vector<8x32xf32>
    %146 = arith.subf %129, %145 : vector<8x32xf32>
    %cst_74 = arith.constant 9.99999974E-6 : f32
    %147 = vector.broadcast %cst_74 : f32 to vector<8x1xf32>
    %148 = arith.addf %144, %147 : vector<8x1xf32>
    %149 = math.rsqrt %148 : vector<8x1xf32>
    %150 = vector.broadcast %149 : vector<8x1xf32> to vector<8x32xf32>
    %151 = arith.mulf %146, %150 : vector<8x32xf32>
    %152 = vector.broadcast %131 : vector<1x32xf32> to vector<8x32xf32>
    %153 = arith.mulf %151, %152 : vector<8x32xf32>
    %154 = vector.broadcast %133 : vector<1x32xf32> to vector<8x32xf32>
    %155 = arith.addf %153, %154 : vector<8x32xf32>
    %c1_75 = arith.constant 1 : index
    %c0_76 = arith.constant 0 : index
    %c0_77 = arith.constant 0 : index
    %156 = vector.load %arg7[%c1_75, %c0_76, %c0_77] : memref<2x32x96xf32, #tpu.memory_space<vmem>>, vector<1x32x96xf32>
    %157 = vector.shape_cast %156 : vector<1x32x96xf32> to vector<32x96xf32>
    %cst_78 = arith.constant dense<0.000000e+00> : vector<8x96xf32>
    %158 = tpu.matmul %155, %157, %cst_78 {dimension_numbers = #tpu.dot_dimension_numbers<[1], [0], [0], [1], [0, 0, 1, 1], [], []>} : vector<8x32xf32>, vector<32x96xf32>, vector<8x96xf32> -> vector<8x96xf32>
    %c1_79 = arith.constant 1 : index
    %c0_80 = arith.constant 0 : index
    %c0_81 = arith.constant 0 : index
    %159 = vector.load %arg8[%c1_79, %c0_80, %c0_81] : memref<2x1x96xf32, #tpu.memory_space<vmem>>, vector<1x1x96xf32>
    %160 = vector.shape_cast %159 : vector<1x1x96xf32> to vector<1x96xf32>
    %161 = vector.broadcast %160 : vector<1x96xf32> to vector<8x96xf32>
    %162 = arith.addf %158, %161 : vector<8x96xf32>
    %c1_82 = arith.constant 1 : index
    %c0_83 = arith.constant 0 : index
    %c0_84 = arith.constant 0 : index
    %163 = vector.load %arg9[%c1_82, %c0_83, %c0_84] : memref<2x32x32xf32, #tpu.memory_space<vmem>>, vector<1x32x32xf32>
    %164 = vector.shape_cast %163 : vector<1x32x32xf32> to vector<32x32xf32>
    %165 = vector.extract_strided_slice %162 {offsets = [0, 0], sizes = [8, 16], strides = [1, 1]} : vector<8x96xf32> to vector<8x16xf32>
    %166 = vector.extract_strided_slice %162 {offsets = [0, 32], sizes = [8, 16], strides = [1, 1]} : vector<8x96xf32> to vector<8x16xf32>
    %167 = vector.extract_strided_slice %162 {offsets = [0, 64], sizes = [8, 16], strides = [1, 1]} : vector<8x96xf32> to vector<8x16xf32>
    %cst_85 = arith.constant dense<0.000000e+00> : vector<8x8xf32>
    %168 = tpu.matmul %165, %166, %cst_85 {dimension_numbers = #tpu.dot_dimension_numbers<[1], [1], [0], [0], [0, 0, 1, 0], [], []>} : vector<8x16xf32>, vector<8x16xf32>, vector<8x8xf32> -> vector<8x8xf32>
    %169 = arith.addf %168, %3 : vector<8x8xf32>
    %cst_86 = arith.constant dense<0xFF800000> : vector<8xf32>
    %170 = vector.multi_reduction <maximumf>, %169, %cst_86 [1] : vector<8x8xf32> to vector<8xf32>
    %171 = vector.shape_cast %170 : vector<8xf32> to vector<8x1xf32>
    %172 = vector.broadcast %171 : vector<8x1xf32> to vector<8x8xf32>
    %173 = arith.subf %169, %172 : vector<8x8xf32>
    %174 = math.exp %173 : vector<8x8xf32>
    %cst_87 = arith.constant dense<0.000000e+00> : vector<8xf32>
    %175 = vector.multi_reduction <add>, %174, %cst_87 [1] : vector<8x8xf32> to vector<8xf32>
    %176 = vector.shape_cast %175 : vector<8xf32> to vector<8x1xf32>
    %177 = tpu.reciprocal %176 {approx = true} : vector<8x1xf32> -> vector<8x1xf32>
    %178 = vector.broadcast %177 : vector<8x1xf32> to vector<8x8xf32>
    %179 = arith.mulf %174, %178 : vector<8x8xf32>
    %cst_88 = arith.constant dense<0.000000e+00> : vector<8x16xf32>
    %180 = tpu.matmul %179, %167, %cst_88 {dimension_numbers = #tpu.dot_dimension_numbers<[1], [0], [0], [1], [0, 0, 1, 1], [], []>} : vector<8x8xf32>, vector<8x16xf32>, vector<8x16xf32> -> vector<8x16xf32>
    %181 = vector.extract_strided_slice %164 {offsets = [0, 0], sizes = [16, 32], strides = [1, 1]} : vector<32x32xf32> to vector<16x32xf32>
    %cst_89 = arith.constant dense<0.000000e+00> : vector<8x32xf32>
    %182 = tpu.matmul %180, %181, %cst_89 {dimension_numbers = #tpu.dot_dimension_numbers<[1], [0], [0], [1], [0, 0, 1, 1], [], []>} : vector<8x16xf32>, vector<16x32xf32>, vector<8x32xf32> -> vector<8x32xf32>
    %183 = vector.extract_strided_slice %162 {offsets = [0, 16], sizes = [8, 16], strides = [1, 1]} : vector<8x96xf32> to vector<8x16xf32>
    %184 = vector.extract_strided_slice %162 {offsets = [0, 48], sizes = [8, 16], strides = [1, 1]} : vector<8x96xf32> to vector<8x16xf32>
    %185 = vector.extract_strided_slice %162 {offsets = [0, 80], sizes = [8, 16], strides = [1, 1]} : vector<8x96xf32> to vector<8x16xf32>
    %cst_90 = arith.constant dense<0.000000e+00> : vector<8x8xf32>
    %186 = tpu.matmul %183, %184, %cst_90 {dimension_numbers = #tpu.dot_dimension_numbers<[1], [1], [0], [0], [0, 0, 1, 0], [], []>} : vector<8x16xf32>, vector<8x16xf32>, vector<8x8xf32> -> vector<8x8xf32>
    %187 = arith.addf %186, %3 : vector<8x8xf32>
    %cst_91 = arith.constant dense<0xFF800000> : vector<8xf32>
    %188 = vector.multi_reduction <maximumf>, %187, %cst_91 [1] : vector<8x8xf32> to vector<8xf32>
    %189 = vector.shape_cast %188 : vector<8xf32> to vector<8x1xf32>
    %190 = vector.broadcast %189 : vector<8x1xf32> to vector<8x8xf32>
    %191 = arith.subf %187, %190 : vector<8x8xf32>
    %192 = math.exp %191 : vector<8x8xf32>
    %cst_92 = arith.constant dense<0.000000e+00> : vector<8xf32>
    %193 = vector.multi_reduction <add>, %192, %cst_92 [1] : vector<8x8xf32> to vector<8xf32>
    %194 = vector.shape_cast %193 : vector<8xf32> to vector<8x1xf32>
    %195 = tpu.reciprocal %194 {approx = true} : vector<8x1xf32> -> vector<8x1xf32>
    %196 = vector.broadcast %195 : vector<8x1xf32> to vector<8x8xf32>
    %197 = arith.mulf %192, %196 : vector<8x8xf32>
    %cst_93 = arith.constant dense<0.000000e+00> : vector<8x16xf32>
    %198 = tpu.matmul %197, %185, %cst_93 {dimension_numbers = #tpu.dot_dimension_numbers<[1], [0], [0], [1], [0, 0, 1, 1], [], []>} : vector<8x8xf32>, vector<8x16xf32>, vector<8x16xf32> -> vector<8x16xf32>
    %199 = vector.extract_strided_slice %164 {offsets = [16, 0], sizes = [16, 32], strides = [1, 1]} : vector<32x32xf32> to vector<16x32xf32>
    %cst_94 = arith.constant dense<0.000000e+00> : vector<8x32xf32>
    %200 = tpu.matmul %198, %199, %cst_94 {dimension_numbers = #tpu.dot_dimension_numbers<[1], [0], [0], [1], [0, 0, 1, 1], [], []>} : vector<8x16xf32>, vector<16x32xf32>, vector<8x32xf32> -> vector<8x32xf32>
    %201 = arith.addf %182, %200 : vector<8x32xf32>
    %202 = arith.addf %129, %201 : vector<8x32xf32>
    %c1_95 = arith.constant 1 : index
    %c0_96 = arith.constant 0 : index
    %c0_97 = arith.constant 0 : index
    %203 = vector.load %arg10[%c1_95, %c0_96, %c0_97] : memref<2x1x32xf32, #tpu.memory_space<vmem>>, vector<1x1x32xf32>
    %204 = vector.shape_cast %203 : vector<1x1x32xf32> to vector<1x32xf32>
    %205 = vector.broadcast %204 : vector<1x32xf32> to vector<8x32xf32>
    %206 = arith.addf %202, %205 : vector<8x32xf32>
    %c1_98 = arith.constant 1 : index
    %c0_99 = arith.constant 0 : index
    %c0_100 = arith.constant 0 : index
    %207 = vector.load %arg11[%c1_98, %c0_99, %c0_100] : memref<2x1x32xf32, #tpu.memory_space<vmem>>, vector<1x1x32xf32>
    %208 = vector.shape_cast %207 : vector<1x1x32xf32> to vector<1x32xf32>
    %c1_101 = arith.constant 1 : index
    %c0_102 = arith.constant 0 : index
    %c0_103 = arith.constant 0 : index
    %209 = vector.load %arg12[%c1_101, %c0_102, %c0_103] : memref<2x1x32xf32, #tpu.memory_space<vmem>>, vector<1x1x32xf32>
    %210 = vector.shape_cast %209 : vector<1x1x32xf32> to vector<1x32xf32>
    %cst_104 = arith.constant dense<0.000000e+00> : vector<8xf32>
    %211 = vector.multi_reduction <add>, %206, %cst_104 [1] : vector<8x32xf32> to vector<8xf32>
    %212 = vector.shape_cast %211 : vector<8xf32> to vector<8x1xf32>
    %cst_105 = arith.constant 3.200000e+01 : f32
    %213 = vector.broadcast %cst_105 : f32 to vector<8x1xf32>
    %214 = arith.divf %212, %213 : vector<8x1xf32>
    %215 = vector.broadcast %214 : vector<8x1xf32> to vector<8x32xf32>
    %216 = arith.subf %206, %215 : vector<8x32xf32>
    %217 = arith.mulf %216, %216 : vector<8x32xf32>
    %cst_106 = arith.constant dense<0.000000e+00> : vector<8xf32>
    %218 = vector.multi_reduction <add>, %217, %cst_106 [1] : vector<8x32xf32> to vector<8xf32>
    %219 = vector.shape_cast %218 : vector<8xf32> to vector<8x1xf32>
    %cst_107 = arith.constant 3.200000e+01 : f32
    %220 = vector.broadcast %cst_107 : f32 to vector<8x1xf32>
    %221 = arith.divf %219, %220 : vector<8x1xf32>
    %222 = vector.broadcast %214 : vector<8x1xf32> to vector<8x32xf32>
    %223 = arith.subf %206, %222 : vector<8x32xf32>
    %cst_108 = arith.constant 9.99999974E-6 : f32
    %224 = vector.broadcast %cst_108 : f32 to vector<8x1xf32>
    %225 = arith.addf %221, %224 : vector<8x1xf32>
    %226 = math.rsqrt %225 : vector<8x1xf32>
    %227 = vector.broadcast %226 : vector<8x1xf32> to vector<8x32xf32>
    %228 = arith.mulf %223, %227 : vector<8x32xf32>
    %229 = vector.broadcast %208 : vector<1x32xf32> to vector<8x32xf32>
    %230 = arith.mulf %228, %229 : vector<8x32xf32>
    %231 = vector.broadcast %210 : vector<1x32xf32> to vector<8x32xf32>
    %232 = arith.addf %230, %231 : vector<8x32xf32>
    %c1_109 = arith.constant 1 : index
    %c0_110 = arith.constant 0 : index
    %c0_111 = arith.constant 0 : index
    %233 = vector.load %arg13[%c1_109, %c0_110, %c0_111] : memref<2x32x128xf32, #tpu.memory_space<vmem>>, vector<1x32x128xf32>
    %234 = vector.shape_cast %233 : vector<1x32x128xf32> to vector<32x128xf32>
    %cst_112 = arith.constant dense<0.000000e+00> : vector<8x128xf32>
    %235 = tpu.matmul %232, %234, %cst_112 {dimension_numbers = #tpu.dot_dimension_numbers<[1], [0], [0], [1], [0, 0, 1, 1], [], []>} : vector<8x32xf32>, vector<32x128xf32>, vector<8x128xf32> -> vector<8x128xf32>
    %c1_113 = arith.constant 1 : index
    %c0_114 = arith.constant 0 : index
    %c0_115 = arith.constant 0 : index
    %236 = vector.load %arg14[%c1_113, %c0_114, %c0_115] : memref<2x1x128xf32, #tpu.memory_space<vmem>>, vector<1x1x128xf32>
    %237 = vector.shape_cast %236 : vector<1x1x128xf32> to vector<1x128xf32>
    %238 = vector.broadcast %237 : vector<1x128xf32> to vector<8x128xf32>
    %239 = arith.addf %235, %238 : vector<8x128xf32>
    %cst_116 = arith.constant 1.702000e+00 : f32
    %240 = vector.broadcast %cst_116 : f32 to vector<8x128xf32>
    %241 = arith.mulf %240, %239 : vector<8x128xf32>
    %242 = arith.negf %241 : vector<8x128xf32>
    %243 = math.exp %242 : vector<8x128xf32>
    %cst_117 = arith.constant 1.000000e+00 : f32
    %244 = vector.broadcast %cst_117 : f32 to vector<8x128xf32>
    %245 = arith.addf %244, %243 : vector<8x128xf32>
    %246 = arith.divf %244, %245 : vector<8x128xf32>
    %247 = arith.mulf %239, %246 : vector<8x128xf32>
    %c1_118 = arith.constant 1 : index
    %c0_119 = arith.constant 0 : index
    %c0_120 = arith.constant 0 : index
    %248 = vector.load %arg15[%c1_118, %c0_119, %c0_120] : memref<2x128x32xf32, #tpu.memory_space<vmem>>, vector<1x128x32xf32>
    %249 = vector.shape_cast %248 : vector<1x128x32xf32> to vector<128x32xf32>
    %cst_121 = arith.constant dense<0.000000e+00> : vector<8x32xf32>
    %250 = tpu.matmul %247, %249, %cst_121 {dimension_numbers = #tpu.dot_dimension_numbers<[1], [0], [0], [1], [0, 0, 1, 1], [], []>} : vector<8x128xf32>, vector<128x32xf32>, vector<8x32xf32> -> vector<8x32xf32>
    %251 = arith.addf %206, %250 : vector<8x32xf32>
    %c1_122 = arith.constant 1 : index
    %c0_123 = arith.constant 0 : index
    %c0_124 = arith.constant 0 : index
    %252 = vector.load %arg16[%c1_122, %c0_123, %c0_124] : memref<2x1x32xf32, #tpu.memory_space<vmem>>, vector<1x1x32xf32>
    %253 = vector.shape_cast %252 : vector<1x1x32xf32> to vector<1x32xf32>
    %254 = vector.broadcast %253 : vector<1x32xf32> to vector<8x32xf32>
    %255 = arith.addf %251, %254 : vector<8x32xf32>
    %256 = tpu.iota {dimensions = array<i32: 0>} : vector<8x8xi32>
    %257 = tpu.iota {dimensions = array<i32: 1>} : vector<8x8xi32>
    %cst_125 = arith.constant 0.000000e+00 : f32
    %258 = vector.broadcast %cst_125 : f32 to vector<8x8xf32>
    %c1_i32 = arith.constant 1 : i32
    %259 = arith.muli %arg0, %c1_i32 : i32
    %c0_i32 = arith.constant 0 : i32
    %260 = arith.addi %259, %c0_i32 : i32
    %261 = arith.index_cast %260 : i32 to index
    %262 = memref.load %arg1[%261] : memref<2xi32, #tpu.memory_space<smem>>
    %c0_i32_126 = arith.constant 0 : i32
    %263 = arith.addi %c0_i32_126, %262 : i32
    %c0_i32_127 = arith.constant 0 : i32
    %264 = vector.broadcast %c0_i32_127 : i32 to vector<8x8xi32>
    %265 = arith.cmpi eq, %256, %264 : vector<8x8xi32>
    %266 = vector.broadcast %263 : i32 to vector<8x8xi32>
    %267 = arith.cmpi eq, %257, %266 : vector<8x8xi32>
    %268 = arith.andi %265, %267 : vector<8x8xi1>
    %cst_128 = arith.constant 1.000000e+00 : f32
    %cst_129 = arith.constant 0.000000e+00 : f32
    %269 = vector.broadcast %cst_128 : f32 to vector<8x8xf32>
    %270 = vector.broadcast %cst_129 : f32 to vector<8x8xf32>
    %271 = arith.select %268, %269, %270 : vector<8x8xi1>, vector<8x8xf32>
    %272 = arith.addf %258, %271 : vector<8x8xf32>
    %cst_130 = arith.constant dense<0.000000e+00> : vector<8x32xf32>
    %273 = tpu.matmul %272, %255, %cst_130 {dimension_numbers = #tpu.dot_dimension_numbers<[1], [0], [0], [1], [0, 0, 1, 1], [], []>} : vector<8x8xf32>, vector<8x32xf32>, vector<8x32xf32> -> vector<8x32xf32>
    %c0_131 = arith.constant 0 : index
    %c0_132 = arith.constant 0 : index
    %274 = vector.load %arg17[%c0_131, %c0_132] : memref<1x32xf32, #tpu.memory_space<vmem>>, vector<1x32xf32>
    %c0_133 = arith.constant 0 : index
    %c0_134 = arith.constant 0 : index
    %275 = vector.load %arg18[%c0_133, %c0_134] : memref<1x32xf32, #tpu.memory_space<vmem>>, vector<1x32xf32>
    %cst_135 = arith.constant dense<0.000000e+00> : vector<8xf32>
    %276 = vector.multi_reduction <add>, %273, %cst_135 [1] : vector<8x32xf32> to vector<8xf32>
    %277 = vector.shape_cast %276 : vector<8xf32> to vector<8x1xf32>
    %cst_136 = arith.constant 3.200000e+01 : f32
    %278 = vector.broadcast %cst_136 : f32 to vector<8x1xf32>
    %279 = arith.divf %277, %278 : vector<8x1xf32>
    %280 = vector.broadcast %279 : vector<8x1xf32> to vector<8x32xf32>
    %281 = arith.subf %273, %280 : vector<8x32xf32>
    %282 = arith.mulf %281, %281 : vector<8x32xf32>
    %cst_137 = arith.constant dense<0.000000e+00> : vector<8xf32>
    %283 = vector.multi_reduction <add>, %282, %cst_137 [1] : vector<8x32xf32> to vector<8xf32>
    %284 = vector.shape_cast %283 : vector<8xf32> to vector<8x1xf32>
    %cst_138 = arith.constant 3.200000e+01 : f32
    %285 = vector.broadcast %cst_138 : f32 to vector<8x1xf32>
    %286 = arith.divf %284, %285 : vector<8x1xf32>
    %287 = vector.broadcast %279 : vector<8x1xf32> to vector<8x32xf32>
    %288 = arith.subf %273, %287 : vector<8x32xf32>
    %cst_139 = arith.constant 9.99999974E-6 : f32
    %289 = vector.broadcast %cst_139 : f32 to vector<8x1xf32>
    %290 = arith.addf %286, %289 : vector<8x1xf32>
    %291 = math.rsqrt %290 : vector<8x1xf32>
    %292 = vector.broadcast %291 : vector<8x1xf32> to vector<8x32xf32>
    %293 = arith.mulf %288, %292 : vector<8x32xf32>
    %294 = vector.broadcast %274 : vector<1x32xf32> to vector<8x32xf32>
    %295 = arith.mulf %293, %294 : vector<8x32xf32>
    %296 = vector.broadcast %275 : vector<1x32xf32> to vector<8x32xf32>
    %297 = arith.addf %295, %296 : vector<8x32xf32>
    %c0_140 = arith.constant 0 : index
    %c0_141 = arith.constant 0 : index
    %298 = vector.load %arg19[%c0_140, %c0_141] : memref<32x128xf32, #tpu.memory_space<vmem>>, vector<32x128xf32>
    %cst_142 = arith.constant dense<0.000000e+00> : vector<8x128xf32>
    %299 = tpu.matmul %297, %298, %cst_142 {dimension_numbers = #tpu.dot_dimension_numbers<[1], [0], [0], [1], [0, 0, 1, 1], [], []>} : vector<8x32xf32>, vector<32x128xf32>, vector<8x128xf32> -> vector<8x128xf32>
    %c0_143 = arith.constant 0 : index
    %c0_144 = arith.constant 0 : index
    %300 = vector.load %arg20[%c0_143, %c0_144] : memref<8x128xf32, #tpu.memory_space<vmem>>, vector<8x128xf32>
    tpu.vector_store %arg20[%c0_143, %c0_144], %299 {strides = array<i32>} : memref<8x128xf32, #tpu.memory_space<vmem>>, vector<8x128xf32>,
    return
  }
  func.func @transform_0(%arg0: i32, %arg1: memref<2xi32, #tpu.memory_space<smem>>) -> (i32, i32) {
    %c0_i32 = arith.constant 0 : i32
    %c0_i32_0 = arith.constant 0 : i32
    return %arg0, %c0_i32 : i32, i32
  }
  func.func @transform_1(%arg0: i32, %arg1: memref<2xi32, #tpu.memory_space<smem>>) -> (i32, i32) {
    %c0_i32 = arith.constant 0 : i32
    %c0_i32_0 = arith.constant 0 : i32
    %c0_i32_1 = arith.constant 0 : i32
    return %c0_i32, %c0_i32_0 : i32, i32
  }
  func.func @transform_2(%arg0: i32, %arg1: memref<2xi32, #tpu.memory_space<smem>>) -> (i32, i32) {
    %c0_i32 = arith.constant 0 : i32
    %c0_i32_0 = arith.constant 0 : i32
    %c0_i32_1 = arith.constant 0 : i32
    return %c0_i32, %c0_i32_0 : i32, i32
  }
  func.func @transform_3(%arg0: i32, %arg1: memref<2xi32, #tpu.memory_space<smem>>) -> (i32, i32, i32) {
    %c0_i32 = arith.constant 0 : i32
    %c0_i32_0 = arith.constant 0 : i32
    %c0_i32_1 = arith.constant 0 : i32
    %c0_i32_2 = arith.constant 0 : i32
    return %c0_i32, %c0_i32_0, %c0_i32_1 : i32, i32, i32
  }
  func.func @transform_4(%arg0: i32, %arg1: memref<2xi32, #tpu.memory_space<smem>>) -> (i32, i32, i32) {
    %c0_i32 = arith.constant 0 : i32
    %c0_i32_0 = arith.constant 0 : i32
    %c0_i32_1 = arith.constant 0 : i32
    %c0_i32_2 = arith.constant 0 : i32
    return %c0_i32, %c0_i32_0, %c0_i32_1 : i32, i32, i32
  }
  func.func @transform_5(%arg0: i32, %arg1: memref<2xi32, #tpu.memory_space<smem>>) -> (i32, i32, i32) {
    %c0_i32 = arith.constant 0 : i32
    %c0_i32_0 = arith.constant 0 : i32
    %c0_i32_1 = arith.constant 0 : i32
    %c0_i32_2 = arith.constant 0 : i32
    return %c0_i32, %c0_i32_0, %c0_i32_1 : i32, i32, i32
  }
  func.func @transform_6(%arg0: i32, %arg1: memref<2xi32, #tpu.memory_space<smem>>) -> (i32, i32, i32) {
    %c0_i32 = arith.constant 0 : i32
    %c0_i32_0 = arith.constant 0 : i32
    %c0_i32_1 = arith.constant 0 : i32
    %c0_i32_2 = arith.constant 0 : i32
    return %c0_i32, %c0_i32_0, %c0_i32_1 : i32, i32, i32
  }
  func.func @transform_7(%arg0: i32, %arg1: memref<2xi32, #tpu.memory_space<smem>>) -> (i32, i32, i32) {
    %c0_i32 = arith.constant 0 : i32
    %c0_i32_0 = arith.constant 0 : i32
    %c0_i32_1 = arith.constant 0 : i32
    %c0_i32_2 = arith.constant 0 : i32
    return %c0_i32, %c0_i32_0, %c0_i32_1 : i32, i32, i32
  }
  func.func @transform_8(%arg0: i32, %arg1: memref<2xi32, #tpu.memory_space<smem>>) -> (i32, i32, i32) {
    %c0_i32 = arith.constant 0 : i32
    %c0_i32_0 = arith.constant 0 : i32
    %c0_i32_1 = arith.constant 0 : i32
    %c0_i32_2 = arith.constant 0 : i32
    return %c0_i32, %c0_i32_0, %c0_i32_1 : i32, i32, i32
  }
  func.func @transform_9(%arg0: i32, %arg1: memref<2xi32, #tpu.memory_space<smem>>) -> (i32, i32, i32) {
    %c0_i32 = arith.constant 0 : i32
    %c0_i32_0 = arith.constant 0 : i32
    %c0_i32_1 = arith.constant 0 : i32
    %c0_i32_2 = arith.constant 0 : i32
    return %c0_i32, %c0_i32_0, %c0_i32_1 : i32, i32, i32
  }
  func.func @transform_10(%arg0: i32, %arg1: memref<2xi32, #tpu.memory_space<smem>>) -> (i32, i32, i32) {
    %c0_i32 = arith.constant 0 : i32
    %c0_i32_0 = arith.constant 0 : i32
    %c0_i32_1 = arith.constant 0 : i32
    %c0_i32_2 = arith.constant 0 : i32
    return %c0_i32, %c0_i32_0, %c0_i32_1 : i32, i32, i32
  }
  func.func @transform_11(%arg0: i32, %arg1: memref<2xi32, #tpu.memory_space<smem>>) -> (i32, i32, i32) {
    %c0_i32 = arith.constant 0 : i32
    %c0_i32_0 = arith.constant 0 : i32
    %c0_i32_1 = arith.constant 0 : i32
    %c0_i32_2 = arith.constant 0 : i32
    return %c0_i32, %c0_i32_0, %c0_i32_1 : i32, i32, i32
  }
  func.func @transform_12(%arg0: i32, %arg1: memref<2xi32, #tpu.memory_space<smem>>) -> (i32, i32, i32) {
    %c0_i32 = arith.constant 0 : i32
    %c0_i32_0 = arith.constant 0 : i32
    %c0_i32_1 = arith.constant 0 : i32
    %c0_i32_2 = arith.constant 0 : i32
    return %c0_i32, %c0_i32_0, %c0_i32_1 : i32, i32, i32
  }
  func.func @transform_13(%arg0: i32, %arg1: memref<2xi32, #tpu.memory_space<smem>>) -> (i32, i32, i32) {
    %c0_i32 = arith.constant 0 : i32
    %c0_i32_0 = arith.constant 0 : i32
    %c0_i32_1 = arith.constant 0 : i32
    %c0_i32_2 = arith.constant 0 : i32
    return %c0_i32, %c0_i32_0, %c0_i32_1 : i32, i32, i32
  }
  func.func @transform_14(%arg0: i32, %arg1: memref<2xi32, #tpu.memory_space<smem>>) -> (i32, i32, i32) {
    %c0_i32 = arith.constant 0 : i32
    %c0_i32_0 = arith.constant 0 : i32
    %c0_i32_1 = arith.constant 0 : i32
    %c0_i32_2 = arith.constant 0 : i32
    return %c0_i32, %c0_i32_0, %c0_i32_1 : i32, i32, i32
  }
  func.func @transform_15(%arg0: i32, %arg1: memref<2xi32, #tpu.memory_space<smem>>) -> (i32, i32) {
    %c0_i32 = arith.constant 0 : i32
    %c0_i32_0 = arith.constant 0 : i32
    %c0_i32_1 = arith.constant 0 : i32
    return %c0_i32, %c0_i32_0 : i32, i32
  }
  func.func @transform_16(%arg0: i32, %arg1: memref<2xi32, #tpu.memory_space<smem>>) -> (i32, i32) {
    %c0_i32 = arith.constant 0 : i32
    %c0_i32_0 = arith.constant 0 : i32
    %c0_i32_1 = arith.constant 0 : i32
    return %c0_i32, %c0_i32_0 : i32, i32
  }
  func.func @transform_17(%arg0: i32, %arg1: memref<2xi32, #tpu.memory_space<smem>>) -> (i32, i32) {
    %c0_i32 = arith.constant 0 : i32
    %c0_i32_0 = arith.constant 0 : i32
    %c0_i32_1 = arith.constant 0 : i32
    return %c0_i32, %c0_i32_0 : i32, i32
  }
  func.func @transform_18(%arg0: i32, %arg1: memref<2xi32, #tpu.memory_space<smem>>) -> (i32, i32) {
    %c0_i32 = arith.constant 0 : i32
    %c0_i32_0 = arith.constant 0 : i32
    return %arg0, %c0_i32 : i32, i32
  }
}

</mosaic_0001>

<bundles_post_ra>
// kernel: text_encoder_forward.1
= control target key start
LH: loop header
LB: loop body
LE: loop exit
PB: predicated region body
PF: predicated region fallthrough
CT: control target
= control target key end

     0   :  { %s3550_s0 = inlined_call_operand.vmem [shape: s32[2], index: 0, kind: input, shape index: {}]   ;;  %s3551_s1 = inlined_call_operand.vmem [shape: f32[16,32], index: 1, kind: input, shape index: {}]   ;;  %s3552_s2 = inlined_call_operand.vmem [shape: f32[8,32], index: 2, kind: input, shape index: {}]   ;;  %s3553_s3 = inlined_call_operand.vmem [shape: f32[8,8], index: 3, kind: input, shape index: {}]   ;;  %s3554_s4 = inlined_call_operand.vmem [shape: f32[2,1,32], index: 4, kind: input, shape index: {}]   ;;  %s3555_s5 = inlined_call_operand.vmem [shape: f32[2,1,32], index: 5, kind: input, shape index: {}]   ;;  %s3556_s6 = inlined_call_operand.vmem [shape: f32[2,32,96], index: 6, kind: input, shape index: {}]   ;;  %s3557_s7 = inlined_call_operand.vmem [shape: f32[2,1,96], index: 7, kind: input, shape index: {}]   ;;  %s3558_s8 = inlined_call_operand.vmem [shape: f32[2,32,32], index: 8, kind: input, shape index: {}]   ;;  %s3559_s9 = inlined_call_operand.vmem [shape: f32[2,1,32], index: 9, kind: input, shape index: {}]   ;;  %s3560_s10 = inlined_call_operand.vmem [shape: f32[2,1,32], index: 10, kind: input, shape index: {}]   ;;  %s3561_s11 = inlined_call_operand.vmem [shape: f32[2,1,32], index: 11, kind: input, shape index: {}]   ;;  %s3562_s12 = inlined_call_operand.vmem [shape: f32[2,32,128], index: 12, kind: input, shape index: {}]   ;;  %s3563_s13 = inlined_call_operand.vmem [shape: f32[2,1,128], index: 13, kind: input, shape index: {}]   ;;  %s3564_s14 = inlined_call_operand.vmem [shape: f32[2,128,32], index: 14, kind: input, shape index: {}]   ;;  %s3565_s15 = inlined_call_operand.vmem [shape: f32[2,1,32], index: 15, kind: input, shape index: {}]   ;;  %s3566_s16 = inlined_call_operand.vmem [shape: f32[1,32], index: 16, kind: input, shape index: {}]   ;;  %s3567_s17 = inlined_call_operand.vmem [shape: f32[1,32], index: 17, kind: input, shape index: {}]   ;;  %s3568_s18 = inlined_call_operand.vmem [shape: f32[32,128], index: 18, kind: input, shape index: {}]   ;;  %s3569_s19 = inlined_call_operand.vmem [shape: f32[16,128], index: 19, kind: output, shape index: {}]  }
   0x1   :  { %3573 = sst [smem:[#allocation5_spill]] %s3550_s0 }
   0x2   :  { %3574 = sst [smem:[#allocation6_spill]] %s3551_s1  ;;  %s3578_s20 = sld [smem:[#allocation5_spill]] }
   0x3   :  { %3575 = sst [smem:[#allocation7_spill]] %s3552_s2 }
   0x4   :  { %3576 = sst [smem:[#allocation8_spill]] %s3553_s3 }
   0x5   :  { %3577 = sst [smem:[#allocation9_spill]] %s3563_s13 }
   0x8   :  { %s24_s13 = sshll.u32 %s3578_s20, 4  ;;  %s25_s13 = int_to_ptr.vmem [resolvable:$true] %s24_s13 }
   0x9   :  { %s2991_s21 = scalar_lea.vmem %s25_s13, 16  ;;  %p2996_p1 = scmp.lt.s32.totalorder %s25_s13, %s25_s13 }
   0xa   :  { %p2992_p0 = scmp.ne.s32.totalorder %s25_s13, %s2991_s21  ;;  %p2997_p2 = scmp.lt.s32.totalorder %s2991_s21, %s2991_s21 }
   0xc   :  { %p2998_p3 = por %p2997_p2, %p2996_p1 }
   0xe   :  { %p2999_p4 = pnand %p2998_p3, %p2992_p0 }
  0x10   :  { %3002 = shalt.err (!%p2999_p4)  }
  0x11   :  { %s3013_s1 = smov [#allocation3]  }
  0x12   :  { %27 = dma.vmem_to_smem %s25_s13, 16, %s3013_s1, [#allocation2] }
  0x13   :  { %3007 = dma.done.wait [#allocation2], 16 }
  0x14   :  { %3008 = vsyncadd [#allocation2], 4294967280 }
  0x15   :  { %29 = sfence }
  0x16   :  { %s3125_s22 = smov 0  }
  0x17 LB: > { %s3131_s2 = sadd.s32 4294967295, %s3011_s22   ;;  %p2480_p5 = scmp.ge.s32.totalorder %s3011_s22, 1  ;;  %s3011_s22 = sphi %s3125_s22, %s35_s22  }
  0x18   : > { %p518_p6 = scmp.lt.s32.totalorder %s3011_s22, 3 }
  0x1a   : > { %p519_p7 = pnand %p2480_p5, %p518_p6 }
  0x1b   : > { %p570_p8 = scmp.lt.s32.totalorder (!%p519_p7), %s3131_s2, 1  ;;  %s3579_s3 = sld [smem:[#allocation7_spill]] (!%p519_p7)  ;;  %vm584_vm0 = vcmask (!%p519_p7), 261120   ;;  %v613_v9 = vld [vmem:[%s3556_s6] sm:$0xff] (!%p519_p7)  ;;  %v614_v10 = vld [vmem:[%s3556_s6 + $0x8] sm:$0xff] (!%p519_p7)  ;;  %v615_v11 = vld [vmem:[%s3556_s6 + $0x10] sm:$0xff] (!%p519_p7) }
  0x1c   : > { %522 = sbr.rel (%p519_p7) target bundleno = 6069 (0x17b5), region = 92  ;;  %s3580_s28 = sld [smem:[#allocation6_spill]] (!%p519_p7)  ;;  %v3014_v12 = vmov (!%p519_p7), 0.0|0.0   ;;  %v2851_v13 = vpack.c.bf16 (!%p519_p7), %v614_v10, %v613_v9  ;;  %v616_v14 = vld [vmem:[%s3556_s6 + $0x18] sm:$0xff] (!%p519_p7)  ;;  %vm3015_vm1 = vmmov (!%p519_p7), 0   ;;  %v3016_v15 = vmov (!%p519_p7), 0.0  }
  0x1d   : > { %2850 = vmatprep.subr.bf16.mxu0 (!%p519_p7), %v3014_v12  ;;  %2660 = vmatprep.mubr.msk.f32.mxu0 (!%p519_p7), %vm3015_vm1, %v3016_v15  ;;  %v2854_v16 = vpack.c.bf16 (!%p519_p7), %v616_v14, %v615_v11  ;;  %v2483_v21 = vld [vmem:[%s3554_s4] ss:$0 sm:$0xff] (!%p519_p7)  ;;  %s3017_s20 = smov (!%p519_p7), 112   ;;  %s3018_s21 = smov (!%p519_p7), 96   ;;  %vm704_vm2 = vcmask (!%p519_p7), 130048   ;;  %vm779_vm3 = vcmask (!%p519_p7), 64512  }
  0x1e   : > { %2668 = vmatprep.subr.mxu1 (!%p519_p7), %v3016_v15  ;;  %2670 = vmatprep.mubr.msk.f32.mxu1 (!%p519_p7), %vm3015_vm1, %v3016_v15  ;;  %v2484_v23 = vld [vmem:[%s3555_s5] ss:$0 sm:$0xff] (!%p519_p7)  ;;  %s3019_s1 = smov (!%p519_p7), 80   ;;  %s3572_s26 = smov (!%p519_p7), 48   ;;  %v698_v58 = vld [vmem:[%s3558_s8 + $0x8] sm:$0xff] (!%p519_p7)  ;;  %v699_v63 = vld [vmem:[%s3558_s8 + $0x10] sm:$0xff] (!%p519_p7) }
  0x1f   : > { %2852 = vmatpush3.bf16.msra.mxu0 (!%p519_p7), %v2851_v13  ;;  %v2485_v26 = vld [vmem:[%s3557_s7] ss:$0 sm:$0xff] (!%p519_p7)  ;;  %s3021_s27 = smov (!%p519_p7), 64  }
  0x20   : > { %2853 = vmatprep.subr.bf16.mxu0 (!%p519_p7), %v3014_v12  ;;  %v697_v57 = vld [vmem:[%s3558_s8] sm:$0xff] (!%p519_p7) }
  0x21   : > { %v579_v0 = vld [vmem:[%s3579_s3] sm:$0xff] (!%p519_p7)  ;;  %s3581_s3 = sld [smem:[#allocation8_spill]] (!%p519_p7)  ;;  %v2860_v61 = vpack.c.bf16 (!%p519_p7), %v698_v58, %v697_v57  ;;  %v1321_v57 = vld [vmem:[%s3564_s14 + $0x68] sm:$0xff] (!%p519_p7) }
  0x22   : > { %v2495_v13 = vld [vmem:[%s3559_s9] ss:$0 sm:$0xff] (!%p519_p7) }
  0x23   : > { %s3137_s13 = scalar_select %p570_p8, %s3131_s2, 1  ;;  %2855 = vmatpush3.bf16.msra.mxu0 %v2854_v16 }
  0x24   : > { %2663 = vmatprep.subr.mxu0 %v3016_v15 }
  0x25   : > { %s3571_s23 = sshll.u32 %s3137_s13, 3 }
  0x26   : > { %s573_s29 = scalar_lea.vmem %s3580_s28, %s3571_s23  ;;  %s2236_s23 = sld [smem:[#allocation3 + %s3131_s2]] }
  0x27   : > { %v578_v1 = vld [vmem:[%s573_s29] sm:$0xff]  ;;  %s3582_s29 = sld [smem:[#allocation9_spill]]  ;;  %s3584_s28 = sshll.u32 %s3137_s13, 3 }
  0x28   : > { %v3148_v2 = vadd.f32 %v579_v0, %v578_v1  ;;  %v3202_v33 = vld [vmem:[%s3581_s3] sm:$0xff]  ;;  %v700_v0 = vld [vmem:[%s3558_s8 + $0x18] sm:$0xff] }
  0x29   : > { %v2857_v1 = vpack.c.bf16 %v700_v0, %v699_v63 }
  0x2a   : > { %v585_v3 = vsel %vm584_vm0, %v3148_v2, 0.0 }
  0x2b   : > { %586 = vadd.xlane.f32.xlu0 %v585_v3 }
  0xb8   : > { %v587_v4 = vpop.xlane.xlu0 %586 }
  0xb9   : > { %v589_v5 = vmul.f32 0.03125, %v587_v4 }
  0xbb   : > { %v590_v6 = vsub.f32 %v3148_v2, %v589_v5 }
  0xbd   : > { %v591_v7 = vmul.f32 %v590_v6, %v590_v6 }
  0xbf   : > { %v592_v8 = vsel %vm584_vm0, %v591_v7, 0.0 }
  0xc0   : > { %593 = vadd.xlane.f32.xlu0 %v592_v8 }
 0x14d   : > { %v594_v17 = vpop.xlane.xlu0 %593 }
 0x14e   : > { %v595_v18 = vmul.f32 0.03125, %v594_v17 }
 0x150   : > { %v596_v19 = vadd.f32 1e-05, %v595_v18 }
 0x152   : > { %2957 = vrsqrt.f32 %v596_v19 }
 0x15c   : > { %v2958_v20 = vpop.eup %2957 }
 0x15d   : > { %v598_v22 = vmul.f32 %v2958_v20, %v590_v6 }
 0x15f   : > { %v605_v24 = vmul.f32 %v2483_v21, %v598_v22 }
 0x161   : > { %v612_v25 = vadd.f32 %v2484_v23, %v605_v24  ;;  %v1216_v23 = vld [vmem:[%s3562_s12] sm:$0xff] }
 0x163   : > { %2661 = vmatmul.mubr.msk.f32.vlgmr.msra.gmra.mrb[0].mxu0 %vm584_vm0, %v612_v25  ;;  %v1218_v25 = vld [vmem:[%s3562_s12 + $0x10] sm:$0xff] }
 0x164   : > { %2665 = vmatprep.mubr.msk.f32.mxu0 %vm3015_vm1, %v3016_v15 }
 0x236   : > { %v693_v27 = vpop.f32.mrb[0].mxu0 }
 0x237   : > { %v694_v28 = vadd.f32 %v2485_v26, %v693_v27  ;;  %v2662_v29 = vpop.f32.mrb[1].mxu0  ;;  %v1219_v26 = vld [vmem:[%s3562_s12 + $0x18] sm:$0xff] }
 0x238   : > { %v2866_v27 = vpack.c.bf16 %v1219_v26, %v1218_v25  ;;  %v2509_v25 = vld [vmem:[%s3556_s6 + $0x38] sm:$0xff] }
 0x239   : > { %867 = vrot.lane.b32.xlu0 %v694_v28, %s3017_s20  ;;  %702 = vrot.lane.b32.xlu1 %v694_v28, %s3018_s21 }
 0x23d   : > { %869 = vrot.lane.b32.xlu1 %v694_v28, %s3019_s1 }
 0x2ab   : > { %v703_v30 = vpop.permute.xlu1 %702  ;;  %v868_v32 = vpop.permute.xlu0 %867 }
 0x2ac   : > { %2664 = vmatpush3.xpose.msk.msra.mxu0 %vm704_vm2, %v703_v30 }
 0x2ad   : > { %2673 = vmatprep.subr.mxu0 %v3016_v15 }
 0x2af   : > { %2666 = vmatmul.mubr.msk.f32.vlgmr.msra.gmra.mrb[2].mxu0 %vm704_vm2, %v694_v28  ;;  %v870_v31 = vpop.permute.xlu1 %869 }
 0x2b0   : > { %2674 = vmatpush3.xpose.msk.msra.mxu0 %vm704_vm2, %v870_v31  ;;  %2675 = vmatprep.mubr.msk.f32.mxu0 %vm3015_vm1, %v3016_v15 }
 0x2b1   : > { %2856 = vmatprep.subr.bf16.mxu0 %v3014_v12 }
 0x2b3   : > { %2676 = vmatmul.mubr.msk.f32.vlgmr.msra.gmra.mrb[4].mxu0 %vm704_vm2, %v868_v32  ;;  %v2496_v32 = vld [vmem:[%s3560_s10] ss:$0 sm:$0xff] }
 0x2b4   : > { %2687 = vmatprep.mubr.msk.f32.mxu0 %vm3015_vm1, %v3016_v15  ;;  %2858 = vmatpush3.bf16.msra.mxu0 %v2857_v1 }
 0x2b5   : > { %2862 = vmatprep.subr.bf16.mxu0 %v3014_v12 }
 0x382   : > { %v775_v34 = vpop.f32.mrb[2].mxu0 }
 0x383   : > { %v776_v35 = vadd.f32 %v775_v34, %v3202_v33  ;;  %v2667_v36 = vpop.f32.mrb[3].mxu0 }
 0x385   : > { %v780_v37 = vsel %vm779_vm3, %v776_v35, -inf }
 0x386   : > { %781 = vmax.xlane.f32.xlu1 %v780_v37  ;;  %v941_v38 = vpop.f32.mrb[4].mxu0 }
 0x387   : > { %v942_v39 = vadd.f32 %v941_v38, %v3202_v33  ;;  %v2677_v40 = vpop.f32.mrb[5].mxu0  ;;  %v1308_v38 = vld [vmem:[%s3564_s14] sm:$0xff] }
 0x389   : > { %v945_v41 = vsel %vm779_vm3, %v942_v39, -inf }
 0x38a   : > { %946 = vmax.xlane.f32.xlu0 %v945_v41  ;;  %v1310_v41 = vld [vmem:[%s3564_s14 + $0x10] sm:$0xff] }
 0x3a0   : > { %956 = vrot.lane.b32.xlu0 %v694_v28, %s3572_s26 }
 0x413   : > { %v782_v42 = vpop.xlane.xlu1 %781 }
 0x414   : > { %v783_v43 = vsub.f32 %v776_v35, %v782_v42  ;;  %v2497_v35 = vld [vmem:[%s3561_s11] ss:$0 sm:$0xff]  ;;  %v1311_v42 = vld [vmem:[%s3564_s14 + $0x18] sm:$0xff] }
 0x416   : > { %v784_v44 = vmul.f32 1.442695, %v783_v43  ;;  %v2872_v43 = vpack.c.bf16 %v1311_v42, %v1310_v41 }
 0x417   : > { %v947_v45 = vpop.xlane.xlu0 %946 }
 0x418   : > { %2959 = vpow2.f32 %v784_v44  ;;  %v948_v46 = vsub.f32 %v942_v39, %v947_v45  ;;  %v1309_v39 = vld [vmem:[%s3564_s14 + $0x8] sm:$0xff]  ;;  %v1312_v44 = vld [vmem:[%s3564_s14 + $0x20] sm:$0xff] }
 0x419   : > { %v2869_v40 = vpack.c.bf16 %v1309_v39, %v1308_v38  ;;  %v1313_v45 = vld [vmem:[%s3564_s14 + $0x28] sm:$0xff] }
 0x41a   : > { %v949_v47 = vmul.f32 1.442695, %v948_v46  ;;  %v2875_v46 = vpack.c.bf16 %v1313_v45, %v1312_v44 }
 0x41b   : > { %v957_v59 = vpop.permute.xlu0 %956 }
 0x41c   : > { %2961 = vpow2.f32 %v949_v47  ;;  %v1314_v47 = vld [vmem:[%s3564_s14 + $0x30] sm:$0xff] }
 0x422   : > { %v2960_v48 = vpop.eup %2959 }
 0x423   : > { %v786_v49 = vsel %vm779_vm3, %v2960_v48, 0.0 }
 0x424   : > { %787 = vadd.xlane.f32.xlu1 %v786_v49 }
 0x426   : > { %v2962_v50 = vpop.eup %2961 }
 0x427   : > { %v951_v51 = vsel %vm779_vm3, %v2962_v50, 0.0 }
 0x428   : > { %952 = vadd.xlane.f32.xlu1 %v951_v51  ;;  %v1317_v51 = vld [vmem:[%s3564_s14 + $0x48] sm:$0xff] }
 0x439   : > { %791 = vrot.lane.b32.xlu1 %v694_v28, %s3021_s27 }
 0x4b1   : > { %v788_v52 = vpop.xlane.xlu1 %787 }
 0x4b2   : > { %2963 = vrcp.f32 %v788_v52 }
 0x4b5   : > { %v953_v53 = vpop.xlane.xlu1 %952 }
 0x4b6   : > { %2965 = vrcp.f32 %v953_v53  ;;  %v1318_v53 = vld [vmem:[%s3564_s14 + $0x50] sm:$0xff] }
 0x4b9   : > { %v792_v54 = vpop.permute.xlu1 %791 }
 0x4ba   : > { %2669 = vmatpush3.msra.mxu1 %v792_v54  ;;  %v1319_v54 = vld [vmem:[%s3564_s14 + $0x58] sm:$0xff] }
 0x4bb   : > { %2678 = vmatprep.subr.mxu1 %v3016_v15 }
 0x4bc   : > { %v2964_v55 = vpop.eup %2963 }
 0x4bd   : > { %v790_v56 = vmul.f32 %v2964_v55, %v2960_v48  ;;  %v1315_v48 = vld [vmem:[%s3564_s14 + $0x38] sm:$0xff]  ;;  %v2884_v55 = vpack.c.bf16 %v1319_v54, %v1318_v53 }
 0x4be   : > { %v2878_v49 = vpack.c.bf16 %v1315_v48, %v1314_v47 }
 0x4bf   : > { %2671 = vmatmul.mubr.msk.f32.vlgmr.msra.gmra.mrb[0].mxu1 %vm779_vm3, %v790_v56  ;;  %v1320_v56 = vld [vmem:[%s3564_s14 + $0x60] sm:$0xff] }
 0x4c0   : > { %v2966_v60 = vpop.eup %2965  ;;  %2679 = vmatpush3.msra.mxu1 %v957_v59  ;;  %2680 = vmatprep.mubr.msk.f32.mxu1 %vm3015_vm1, %v3016_v15  ;;  %v2887_v58 = vpack.c.bf16 %v1321_v57, %v1320_v56  ;;  %v1322_v59 = vld [vmem:[%s3564_s14 + $0x70] sm:$0xff] }
 0x4c1   : > { %v955_v62 = vmul.f32 %v2966_v60, %v2962_v50  ;;  %2859 = vmatprep.subr.bf16.mxu1 %v3014_v12  ;;  %v1316_v50 = vld [vmem:[%s3564_s14 + $0x40] sm:$0xff]  ;;  %v1323_v60 = vld [vmem:[%s3564_s14 + $0x78] sm:$0xff] }
 0x4c2   : > { %v2881_v52 = vpack.c.bf16 %v1317_v51, %v1316_v50  ;;  %v2513_v51 = vld [vmem:[%s3558_s8 + $0x20] sm:$0xff] }
 0x4c3   : > { %2681 = vmatmul.mubr.msk.f32.vlgmr.msra.gmra.mrb[2].mxu1 %vm779_vm3, %v955_v62  ;;  %v2498_v62 = vld [vmem:[%s3582_s29] ss:$0 sm:$0xff] }
 0x4c4   : > { %2861 = vmatpush3.bf16.msra.mxu1 %v2860_v61  ;;  %2694 = vmatprep.mubr.msk.f32.mxu1 %vm3015_vm1, %v3016_v15  ;;  %v2890_v61 = vpack.c.bf16 %v1323_v60, %v1322_v59 }
 0x4c5   : > { %2868 = vmatprep.subr.bf16.mxu1 %v3014_v12 }
 0x592   : > { %v863_v3 = vpop.f32.mrb[0].mxu1 }
 0x593   : > { %v2672_v4 = vpop.f32.mrb[1].mxu1  ;;  %2695 = vmatmul.mubr.msk.f32.vlgmr.msra.gmra.mrb[4].mxu1 %vm704_vm2, %v863_v3 }
 0x594   : > { %2740 = vmatprep.mubr.msk.f32.mxu1 %vm3015_vm1, %v3016_v15  ;;  %2870 = vmatpush3.bf16.msra.mxu1 %v2869_v40 }
 0x595   : > { %2871 = vmatprep.subr.bf16.mxu1 %v3014_v12 }
 0x596   : > { %v1028_v5 = vpop.f32.mrb[2].mxu1 }
 0x597   : > { %v2682_v6 = vpop.f32.mrb[3].mxu1  ;;  %2688 = vmatmul.mubr.msk.f32.vlgmr.msra.gmra.mrb[6].mxu0 %vm704_vm2, %v1028_v5 }
 0x598   : > { %2705 = vmatprep.mubr.msk.f32.mxu0 %vm3015_vm1, %v3016_v15  ;;  %2873 = vmatpush3.bf16.msra.mxu1 %v2872_v43 }
 0x599   : > { %2874 = vmatprep.subr.bf16.mxu1 %v3014_v12 }
 0x59c   : > { %2876 = vmatpush3.bf16.msra.mxu1 %v2875_v46 }
 0x59d   : > { %2877 = vmatprep.subr.bf16.mxu1 %v3014_v12 }
 0x5a0   : > { %2879 = vmatpush3.bf16.msra.mxu1 %v2878_v49 }
 0x5a1   : > { %2880 = vmatprep.subr.bf16.mxu1 %v3014_v12 }
 0x5a4   : > { %2882 = vmatpush3.bf16.msra.mxu1 %v2881_v52  ;;  %v2514_v52 = vld [vmem:[%s3558_s8 + $0x28] sm:$0xff] }
 0x5a5   : > { %2883 = vmatprep.subr.bf16.mxu1 %v3014_v12  ;;  %v2902_v53 = vpack.c.bf16 %v2514_v52, %v2513_v51  ;;  %v2542_v51 = vld [vmem:[%s3564_s14 + $0x98] sm:$0xff] }
 0x5a8   : > { %2885 = vmatpush3.bf16.msra.mxu1 %v2884_v55 }
 0x5a9   : > { %2886 = vmatprep.subr.bf16.mxu1 %v3014_v12 }
 0x5ac   : > { %2888 = vmatpush3.bf16.msra.mxu1 %v2887_v58 }
 0x5ad   : > { %2889 = vmatprep.subr.bf16.mxu1 %v3014_v12 }
 0x5b0   : > { %2891 = vmatpush3.bf16.msra.mxu1 %v2890_v61 }
 0x5b1   : > { %2901 = vmatprep.subr.bf16.mxu1 %v3014_v12 }
 0x666   : > { %v1174_v7 = vpop.f32.mrb[4].mxu1 }
 0x667   : > { %v2696_v8 = vpop.f32.mrb[5].mxu1 }
 0x66a   : > { %v1101_v9 = vpop.f32.mrb[6].mxu0 }
 0x66b   : > { %v1175_v10 = vadd.f32 %v1174_v7, %v1101_v9  ;;  %v2689_v11 = vpop.f32.mrb[7].mxu0 }
 0x66d   : > { %v1178_v14 = vadd.f32 %v1175_v10, %v3148_v2  ;;  %v1217_v2 = vld [vmem:[%s3562_s12 + $0x8] sm:$0xff]  ;;  %v2501_v10 = vld [vmem:[%s3565_s15] ss:$0 sm:$0xff] }
 0x66e   : > { %v2863_v24 = vpack.c.bf16 %v1217_v2, %v1216_v23  ;;  %v2506_v23 = vld [vmem:[%s3556_s6 + $0x20] sm:$0xff] }
 0x66f   : > { %v3244_v16 = vadd.f32 %v2495_v13, %v1178_v14 }
 0x670   : > { %2864 = vmatpush3.bf16.msra.mxu0 %v2863_v24  ;;  %v2508_v24 = vld [vmem:[%s3556_s6 + $0x30] sm:$0xff] }
 0x671   : > { %v1189_v17 = vsel %vm584_vm0, %v3244_v16, 0.0  ;;  %2865 = vmatprep.subr.bf16.mxu0 %v3014_v12  ;;  %v2896_v26 = vpack.c.bf16 %v2509_v25, %v2508_v24 }
 0x672   : > { %1190 = vadd.xlane.f32.xlu1 %v1189_v17 }
 0x674   : > { %2867 = vmatpush3.bf16.msra.mxu0 %v2866_v27 }
 0x675   : > { %2892 = vmatprep.subr.bf16.mxu0 %v3014_v12 }
 0x6ff   : > { %v1191_v18 = vpop.xlane.xlu1 %1190 }
 0x700   : > { %v1192_v19 = vmul.f32 0.03125, %v1191_v18 }
 0x702   : > { %v1193_v20 = vsub.f32 %v3244_v16, %v1192_v19 }
 0x704   : > { %v1194_v21 = vmul.f32 %v1193_v20, %v1193_v20 }
 0x706   : > { %v1195_v22 = vsel %vm584_vm0, %v1194_v21, 0.0 }
 0x707   : > { %1196 = vadd.xlane.f32.xlu0 %v1195_v22 }
 0x794   : > { %v1197_v28 = vpop.xlane.xlu0 %1196 }
 0x795   : > { %v1198_v29 = vmul.f32 0.03125, %v1197_v28 }
 0x797   : > { %v1199_v30 = vadd.f32 1e-05, %v1198_v29 }
 0x799   : > { %2967 = vrsqrt.f32 %v1199_v30 }
 0x7a3   : > { %v2968_v31 = vpop.eup %2967 }
 0x7a4   : > { %v1201_v34 = vmul.f32 %v2968_v31, %v1193_v20  ;;  %v2504_v31 = vld [vmem:[%s3554_s4 + $0x1] ss:$0 sm:$0xff] }
 0x7a6   : > { %v1208_v36 = vmul.f32 %v2496_v32, %v1201_v34  ;;  %v2505_v34 = vld [vmem:[%s3555_s5 + $0x1] ss:$0 sm:$0xff] }
 0x7a8   : > { %v1215_v37 = vadd.f32 %v2497_v35, %v1208_v36 }
 0x7aa   : > { %2706 = vmatmul.mubr.msk.f32.vlgmr.msra.gmra.mrb[8].mxu0 %vm584_vm0, %v1215_v37  ;;  %v2511_v37 = vld [vmem:[%s3557_s7 + $0x1] ss:$0 sm:$0xff] }
 0x7ab   : > { %2751 = vmatprep.mubr.msk.f32.mxu0 %vm3015_vm1, %v3016_v15 }
 0x87d   : > { %v1296_v63 = vpop.f32.mrb[8].mxu0 }
 0x87e   : > { %v1297_v0 = vadd.f32 %v2498_v62, %v1296_v63  ;;  %v2707_v1 = vpop.f32.mrb[9].mxu0 }
 0x880   : > { %v2500_v3 = vmul.f32 -1.702, %v1297_v0 }
 0x882   : > { %v1302_v4 = vmul.f32 1.442695, %v2500_v3 }
 0x884   : > { %2969 = vpow2.f32 %v1302_v4 }
 0x88e   : > { %v2970_v5 = vpop.eup %2969 }
 0x88f   : > { %v1304_v6 = vadd.f32 1.0, %v2970_v5 }
 0x891   : > { %2971 = vrcp.f32 %v1304_v6 }
 0x89b   : > { %v2972_v7 = vpop.eup %2971 }
 0x89c   : > { %v1307_v8 = vmul.f32 %v2972_v7, %v1297_v0 }
 0x89e   : > { %2741 = vmatmul.mubr.f32.vlgmr.msra.gmra.mrb[6].mxu1 %v1307_v8 }
 0x89f   : > { %2785 = vmatprep.mubr.msk.f32.mxu1 %vm3015_vm1, %v3016_v15  ;;  %2903 = vmatpush3.bf16.msra.mxu1 %v2902_v53  ;;  %v2543_v53 = vld [vmem:[%s3564_s14 + $0xa0] sm:$0xff] }
 0x8a0   : > { %2910 = vmatprep.subr.bf16.mxu1 %v3014_v12 }
 0x971   : > { %v1390_v9 = vpop.f32.mrb[6].mxu1 }
 0x972   : > { %v1394_v11 = vadd.f32 %v1390_v9, %v3244_v16  ;;  %v2742_v13 = vpop.f32.mrb[7].mxu1  ;;  %v2507_v16 = vld [vmem:[%s3556_s6 + $0x28] sm:$0xff] }
 0x973   : > { %v2893_v2 = vpack.c.bf16 %v2507_v16, %v2506_v23  ;;  %v2516_v13 = vld [vmem:[%s3558_s8 + $0x38] sm:$0xff] }
 0x974   : > { %v3338_v14 = vadd.f32 %v2501_v10, %v1394_v11  ;;  %v2515_v11 = vld [vmem:[%s3558_s8 + $0x30] sm:$0xff] }
 0x975   : > { %2894 = vmatpush3.bf16.msra.mxu0 %v2893_v2  ;;  %v2526_v2 = vld [vmem:[%s3559_s9 + $0x1] ss:$0 sm:$0xff] }
 0x976   : > { %v1407_v17 = vsel %vm584_vm0, %v3338_v14, 0.0  ;;  %2895 = vmatprep.subr.bf16.mxu0 %v3014_v12 }
 0x977   : > { %1408 = vadd.xlane.f32.xlu1 %v1407_v17 }
 0x979   : > { %2897 = vmatpush3.bf16.msra.mxu0 %v2896_v26 }
 0x97a   : > { %2754 = vmatprep.subr.mxu0 %v3016_v15 }
 0xa04   : > { %v1409_v18 = vpop.xlane.xlu1 %1408 }
 0xa05   : > { %v1410_v19 = vmul.f32 0.03125, %v1409_v18  ;;  %v2899_v18 = vpack.c.bf16 %v2516_v13, %v2515_v11 }
 0xa07   : > { %v1411_v20 = vsub.f32 %v3338_v14, %v1410_v19 }
 0xa09   : > { %v1412_v21 = vmul.f32 %v1411_v20, %v1411_v20 }
 0xa0b   : > { %v1413_v22 = vsel %vm584_vm0, %v1412_v21, 0.0 }
 0xa0c   : > { %1414 = vadd.xlane.f32.xlu1 %v1413_v22 }
 0xa99   : > { %v1415_v27 = vpop.xlane.xlu1 %1414 }
 0xa9a   : > { %v1416_v28 = vmul.f32 0.03125, %v1415_v27 }
 0xa9c   : > { %v1417_v29 = vadd.f32 1e-05, %v1416_v28 }
 0xa9e   : > { %2973 = vrsqrt.f32 %v1417_v29 }
 0xaa8   : > { %v2974_v30 = vpop.eup %2973 }
 0xaa9   : > { %v1419_v32 = vmul.f32 %v2974_v30, %v1411_v20 }
 0xaab   : > { %v1426_v35 = vmul.f32 %v2504_v31, %v1419_v32  ;;  %v2531_v32 = vld [vmem:[%s3562_s12 + $0x20] sm:$0xff] }
 0xaad   : > { %v1433_v36 = vadd.f32 %v2505_v34, %v1426_v35  ;;  %v2533_v35 = vld [vmem:[%s3562_s12 + $0x30] sm:$0xff] }
 0xaaf   : > { %2752 = vmatmul.mubr.msk.f32.vlgmr.msra.gmra.mrb[10].mxu0 %vm584_vm0, %v1433_v36  ;;  %v2534_v36 = vld [vmem:[%s3562_s12 + $0x38] sm:$0xff] }
 0xab0   : > { %2756 = vmatprep.mubr.msk.f32.mxu0 %vm3015_vm1, %v3016_v15 }
 0xb82   : > { %v1516_v38 = vpop.f32.mrb[10].mxu0 }
 0xb83   : > { %v1517_v39 = vadd.f32 %v2511_v37, %v1516_v38  ;;  %v2753_v40 = vpop.f32.mrb[11].mxu0  ;;  %v2908_v37 = vpack.c.bf16 %v2534_v36, %v2533_v35 }
 0xb85   : > { %1526 = vrot.lane.b32.xlu1 %v1517_v39, %s3018_s21  ;;  %s577_s21 = scalar_lea.vmem %s3569_s19, %s3584_s28 }
 0xb89   : > { %1691 = vrot.lane.b32.xlu1 %v1517_v39, %s3019_s1 }
 0xb8d   : > { %1689 = vrot.lane.b32.xlu1 %v1517_v39, %s3017_s20 }
 0xbf7   : > { %v1527_v41 = vpop.permute.xlu1 %1526 }
 0xbf8   : > { %2755 = vmatpush3.xpose.msk.msra.mxu0 %vm704_vm2, %v1527_v41 }
 0xbf9   : > { %2759 = vmatprep.subr.mxu0 %v3016_v15 }
 0xbfb   : > { %2757 = vmatmul.mubr.msk.f32.vlgmr.msra.gmra.mrb[12].mxu0 %vm704_vm2, %v1517_v39  ;;  %v1692_v57 = vpop.permute.xlu1 %1691 }
 0xbfc   : > { %2761 = vmatprep.mubr.msk.f32.mxu0 %vm3015_vm1, %v3016_v15 }
 0xbff   : > { %v1690_v59 = vpop.permute.xlu1 %1689 }
 0xcce   : > { %v1598_v42 = vpop.f32.mrb[12].mxu0 }
 0xccf   : > { %v1599_v43 = vadd.f32 %v1598_v42, %v3202_v33  ;;  %v2758_v44 = vpop.f32.mrb[13].mxu0  ;;  %v2529_v42 = vld [vmem:[%s3560_s10 + $0x1] ss:$0 sm:$0xff] }
 0xcd0   : > { %v2530_v44 = vld [vmem:[%s3561_s11 + $0x1] ss:$0 sm:$0xff] }
 0xcd1   : > { %v1602_v45 = vsel %vm779_vm3, %v1599_v43, -inf }
 0xcd2   : > { %1603 = vmax.xlane.f32.xlu0 %v1602_v45 }
 0xd5f   : > { %v1604_v46 = vpop.xlane.xlu0 %1603 }
 0xd60   : > { %v1605_v47 = vsub.f32 %v1599_v43, %v1604_v46 }
 0xd62   : > { %v1606_v48 = vmul.f32 1.442695, %v1605_v47  ;;  %v2539_v47 = vld [vmem:[%s3564_s14 + $0x80] sm:$0xff] }
 0xd64   : > { %2975 = vpow2.f32 %v1606_v48  ;;  %v2540_v48 = vld [vmem:[%s3564_s14 + $0x88] sm:$0xff] }
 0xd6e   : > { %v2976_v49 = vpop.eup %2975 }
 0xd6f   : > { %v1608_v50 = vsel %vm779_vm3, %v2976_v49, 0.0 }
 0xd70   : > { %1609 = vadd.xlane.f32.xlu0 %v1608_v50  ;;  %v2541_v50 = vld [vmem:[%s3564_s14 + $0x90] sm:$0xff] }
 0xd71   : > { %v2914_v52 = vpack.c.bf16 %v2542_v51, %v2541_v50 }
 0xd86   : > { %1613 = vrot.lane.b32.xlu0 %v1517_v39, %s3021_s27  ;;  %s3583_s27 = smov 48  }
 0xdfd   : > { %v1610_v54 = vpop.xlane.xlu0 %1609 }
 0xdfe   : > { %2977 = vrcp.f32 %v1610_v54  ;;  %v2544_v54 = vld [vmem:[%s3564_s14 + $0xa8] sm:$0xff] }
 0xe01   : > { %v1614_v55 = vpop.permute.xlu0 %1613 }
 0xe02   : > { %2760 = vmatpush3.msra.mxu0 %v1614_v55  ;;  %v2917_v55 = vpack.c.bf16 %v2544_v54, %v2543_v53 }
 0xe03   : > { %2764 = vmatprep.subr.mxu0 %v3016_v15 }
 0xe08   : > { %v2978_v56 = vpop.eup %2977 }
 0xe09   : > { %v1612_v58 = vmul.f32 %v2978_v56, %v2976_v49  ;;  %v2911_v49 = vpack.c.bf16 %v2540_v48, %v2539_v47  ;;  %v2545_v56 = vld [vmem:[%s3564_s14 + $0xb0] sm:$0xff]  ;;  %v2559_v47 = vld [vmem:[%s3567_s17] ss:$0 sm:$0xff] }
 0xe0b   : > { %2762 = vmatmul.mubr.msk.f32.vlgmr.msra.gmra.mrb[14].mxu0 %vm779_vm3, %v1612_v58 }
 0xe0c   : > { %2765 = vmatpush3.xpose.msk.msra.mxu0 %vm704_vm2, %v1692_v57  ;;  %2766 = vmatprep.mubr.msk.f32.mxu0 %vm3015_vm1, %v3016_v15  ;;  %v2546_v57 = vld [vmem:[%s3564_s14 + $0xb8] sm:$0xff] }
 0xe0d   : > { %2769 = vmatprep.subr.mxu0 %v3016_v15  ;;  %v2920_v58 = vpack.c.bf16 %v2546_v57, %v2545_v56 }
 0xe0f   : > { %2767 = vmatmul.mubr.msk.f32.vlgmr.msra.gmra.mrb[16].mxu0 %vm704_vm2, %v1690_v59  ;;  %v2547_v59 = vld [vmem:[%s3564_s14 + $0xc0] sm:$0xff] }
 0xe10   : > { %2771 = vmatprep.mubr.msk.f32.mxu0 %vm3015_vm1, %v3016_v15 }
 0xede   : > { %v1685_v60 = vpop.f32.mrb[14].mxu0 }
 0xedf   : > { %v2763_v61 = vpop.f32.mrb[15].mxu0  ;;  %2786 = vmatmul.mubr.msk.f32.vlgmr.msra.gmra.mrb[8].mxu1 %vm704_vm2, %v1685_v60  ;;  %v2548_v60 = vld [vmem:[%s3564_s14 + $0xc8] sm:$0xff] }
 0xee0   : > { %2831 = vmatprep.mubr.msk.f32.mxu1 %vm3015_vm1, %v3016_v15  ;;  %2912 = vmatpush3.bf16.msra.mxu1 %v2911_v49  ;;  %v2923_v61 = vpack.c.bf16 %v2548_v60, %v2547_v59 }
 0xee1   : > { %2913 = vmatprep.subr.bf16.mxu1 %v3014_v12 }
 0xee2   : > { %v1763_v62 = vpop.f32.mrb[16].mxu0 }
 0xee3   : > { %v1764_v63 = vadd.f32 %v1763_v62, %v3202_v33  ;;  %v2768_v0 = vpop.f32.mrb[17].mxu0  ;;  %v2549_v62 = vld [vmem:[%s3564_s14 + $0xd0] sm:$0xff] }
 0xee4   : > { %2915 = vmatpush3.bf16.msra.mxu1 %v2914_v52 }
 0xee5   : > { %v1767_v1 = vsel %vm779_vm3, %v1764_v63, -inf  ;;  %2916 = vmatprep.subr.bf16.mxu1 %v3014_v12 }
 0xee6   : > { %1768 = vmax.xlane.f32.xlu1 %v1767_v1  ;;  %v2551_v1 = vld [vmem:[%s3564_s14 + $0xe0] sm:$0xff] }
 0xee8   : > { %2918 = vmatpush3.bf16.msra.mxu1 %v2917_v55 }
 0xee9   : > { %2919 = vmatprep.subr.bf16.mxu1 %v3014_v12 }
 0xeec   : > { %2921 = vmatpush3.bf16.msra.mxu1 %v2920_v58 }
 0xeed   : > { %2922 = vmatprep.subr.bf16.mxu1 %v3014_v12 }
 0xef0   : > { %2924 = vmatpush3.bf16.msra.mxu1 %v2923_v61 }
 0xef1   : > { %2925 = vmatprep.subr.bf16.mxu1 %v3014_v12 }
 0xef7   : > { %1778 = vrot.lane.b32.xlu1 %v1517_v39, %s3583_s27 }
 0xf73   : > { %v1769_v3 = vpop.xlane.xlu1 %1768 }
 0xf74   : > { %v1770_v4 = vsub.f32 %v1764_v63, %v1769_v3  ;;  %v2550_v63 = vld [vmem:[%s3564_s14 + $0xd8] sm:$0xff]  ;;  %v2552_v3 = vld [vmem:[%s3564_s14 + $0xe8] sm:$0xff] }
 0xf75   : > { %v2926_v0 = vpack.c.bf16 %v2550_v63, %v2549_v62 }
 0xf76   : > { %v1771_v5 = vmul.f32 1.442695, %v1770_v4  ;;  %v2929_v4 = vpack.c.bf16 %v2552_v3, %v2551_v1 }
 0xf77   : > { %v1779_v6 = vpop.permute.xlu1 %1778  ;;  %2927 = vmatpush3.bf16.msra.mxu1 %v2926_v0 }
 0xf78   : > { %2979 = vpow2.f32 %v1771_v5  ;;  %2770 = vmatpush3.msra.mxu0 %v1779_v6  ;;  %2928 = vmatprep.subr.bf16.mxu1 %v3014_v12  ;;  %v2553_v5 = vld [vmem:[%s3564_s14 + $0xf0] sm:$0xff]  ;;  %v2554_v6 = vld [vmem:[%s3564_s14 + $0xf8] sm:$0xff] }
 0xf79   : > { %2898 = vmatprep.subr.bf16.mxu0 %v3014_v12 }
 0xf7b   : > { %2930 = vmatpush3.bf16.msra.mxu1 %v2929_v4 }
 0xf7c   : > { %2931 = vmatprep.subr.bf16.mxu1 %v3014_v12 }
 0xf82   : > { %v2980_v7 = vpop.eup %2979 }
 0xf83   : > { %v1773_v8 = vsel %vm779_vm3, %v2980_v7, 0.0 }
 0xf84   : > { %1774 = vadd.xlane.f32.xlu0 %v1773_v8  ;;  %v2536_v8 = vld [vmem:[%s3582_s29 + $0x1] ss:$0 sm:$0xff] }
 0xfb2   : > { %v1996_v9 = vpop.f32.mrb[8].mxu1 }
 0xfb3   : > { %v2787_v33 = vpop.f32.mrb[9].mxu1 }
0x1011   : > { %v1775_v10 = vpop.xlane.xlu0 %1774 }
0x1012   : > { %2981 = vrcp.f32 %v1775_v10 }
0x101c   : > { %v2982_v17 = vpop.eup %2981 }
0x101d   : > { %v1777_v19 = vmul.f32 %v2982_v17, %v2980_v7  ;;  %v2932_v7 = vpack.c.bf16 %v2554_v6, %v2553_v5 }
0x101f   : > { %2772 = vmatmul.mubr.msk.f32.vlgmr.msra.gmra.mrb[18].mxu0 %vm779_vm3, %v1777_v19  ;;  %2933 = vmatpush3.bf16.msra.mxu1 %v2932_v7 }
0x1020   : > { %2900 = vmatpush3.bf16.msra.mxu0 %v2899_v18  ;;  %2778 = vmatprep.mubr.msk.f32.mxu0 %vm3015_vm1, %v3016_v15 }
0x1021   : > { %2904 = vmatprep.subr.bf16.mxu0 %v3014_v12 }
0x10f2   : > { %v1850_v20 = vpop.f32.mrb[18].mxu0 }
0x10f3   : > { %v2773_v21 = vpop.f32.mrb[19].mxu0  ;;  %2779 = vmatmul.mubr.msk.f32.vlgmr.msra.gmra.mrb[20].mxu0 %vm704_vm2, %v1850_v20 }
0x10f4   : > { %2796 = vmatprep.mubr.msk.f32.mxu0 %vm3015_vm1, %v3016_v15  ;;  %v2232_v21 = vlaneseq }
0x11c6   : > { %v1923_v22 = vpop.f32.mrb[20].mxu0 }
0x11c7   : > { %v1997_v23 = vadd.f32 %v1996_v9, %v1923_v22  ;;  %v2780_v16 = vpop.f32.mrb[21].mxu0  ;;  %v2233_v22 = vshrl.u32 %v2232_v21, 7 }
0x11c8   : > { %v2238_v16 = vstv %s2236_s23 }
0x11c9   : > { %v2000_v24 = vadd.f32 %v1997_v23, %v3338_v14  ;;  %v2532_v14 = vld [vmem:[%s3562_s12 + $0x28] sm:$0xff]  ;;  %v2235_v23 = vand.u32 127, %v2232_v21  ;;  %vm2237_vm4 = vcmp.eq.s32.totalorder %v2233_v22, 0 }
0x11ca   : > { %v2905_v34 = vpack.c.bf16 %v2532_v14, %v2531_v32 }
0x11cb   : > { %v3423_v25 = vadd.f32 %v2526_v2, %v2000_v24  ;;  %vm2239_vm5 = vcmp.eq.s32.totalorder %v2235_v23, %v2238_v16  ;;  %v2556_v24 = vld [vmem:[%s3565_s15 + $0x1] ss:$0 sm:$0xff] }
0x11cc   : > { %2906 = vmatpush3.bf16.msra.mxu0 %v2905_v34  ;;  %vm2240_vm6 = vmand %vm2237_vm4, %vm2239_vm5 }
0x11cd   : > { %v2014_v26 = vsel %vm584_vm0, %v3423_v25, 0.0  ;;  %2907 = vmatprep.subr.bf16.mxu0 %v3014_v12 }
0x11ce   : > { %2015 = vadd.xlane.f32.xlu0 %v2014_v26 }
0x11d0   : > { %2909 = vmatpush3.bf16.msra.mxu0 %v2908_v37  ;;  %v2345_v37 = vld [vmem:[%s3568_s18] sm:$0xff] }
0x11d1   : > { %2834 = vmatprep.subr.mxu0 %v3016_v15 }
0x125b   : > { %v2016_v27 = vpop.xlane.xlu0 %2015 }
0x125c   : > { %v2017_v28 = vmul.f32 0.03125, %v2016_v27 }
0x125e   : > { %v2018_v29 = vsub.f32 %v3423_v25, %v2017_v28 }
0x1260   : > { %v2019_v30 = vmul.f32 %v2018_v29, %v2018_v29 }
0x1262   : > { %v2020_v31 = vsel %vm584_vm0, %v2019_v30, 0.0 }
0x1263   : > { %2021 = vadd.xlane.f32.xlu0 %v2020_v31 }
0x12f0   : > { %v2022_v38 = vpop.xlane.xlu0 %2021 }
0x12f1   : > { %v2023_v39 = vmul.f32 0.03125, %v2022_v38 }
0x12f3   : > { %v2024_v40 = vadd.f32 1e-05, %v2023_v39  ;;  %v2347_v39 = vld [vmem:[%s3568_s18 + $0x10] sm:$0xff] }
0x12f5   : > { %2983 = vrsqrt.f32 %v2024_v40  ;;  %v2348_v40 = vld [vmem:[%s3568_s18 + $0x18] sm:$0xff] }
0x12ff   : > { %v2984_v41 = vpop.eup %2983 }
0x1300   : > { %v2026_v43 = vmul.f32 %v2984_v41, %v2018_v29  ;;  %v2241_v29 = vsel %vm2240_vm6, 1.0, %v3016_v15  ;;  %v2938_v41 = vpack.c.bf16 %v2348_v40, %v2347_v39 }
0x1302   : > { %v2033_v45 = vmul.f32 %v2529_v42, %v2026_v43 }
0x1304   : > { %v2040_v46 = vadd.f32 %v2530_v44, %v2033_v45 }
0x1306   : > { %2797 = vmatmul.mubr.msk.f32.vlgmr.msra.gmra.mrb[22].mxu0 %vm584_vm0, %v2040_v46 }
0x1307   : > { %2836 = vmatprep.mubr.msk.f32.mxu0 %vm3015_vm1, %v3016_v15 }
0x13d9   : > { %v2123_v9 = vpop.f32.mrb[22].mxu0 }
0x13da   : > { %v2124_v33 = vadd.f32 %v2536_v8, %v2123_v9  ;;  %v2798_v10 = vpop.f32.mrb[23].mxu0 }
0x13dc   : > { %v2538_v11 = vmul.f32 -1.702, %v2124_v33 }
0x13de   : > { %v2129_v13 = vmul.f32 1.442695, %v2538_v11 }
0x13e0   : > { %2985 = vpow2.f32 %v2129_v13 }
0x13ea   : > { %v2986_v17 = vpop.eup %2985 }
0x13eb   : > { %v2131_v18 = vadd.f32 1.0, %v2986_v17 }
0x13ed   : > { %2987 = vrcp.f32 %v2131_v18 }
0x13f7   : > { %v2988_v19 = vpop.eup %2987 }
0x13f8   : > { %v2134_v20 = vmul.f32 %v2988_v19, %v2124_v33 }
0x13fa   : > { %2832 = vmatmul.mubr.f32.vlgmr.msra.gmra.mrb[10].mxu1 %v2134_v20 }
0x14cd   : > { %v2218_v2 = vpop.f32.mrb[10].mxu1 }
0x14ce   : > { %v2222_v26 = vadd.f32 %v2218_v2, %v3423_v25  ;;  %v2833_v27 = vpop.f32.mrb[11].mxu1 }
0x14d0   : > { %v2231_v28 = vadd.f32 %v2556_v24, %v2222_v26 }
0x14d2   : > { %2835 = vmatpush3.msra.mxu0 %v2231_v28 }
0x14d3   : > { %2837 = vmatmul.mubr.msk.f32.vlgmr.msra.gmra.mrb[24].mxu0 %vm779_vm3, %v2241_v29  ;;  %2934 = vmatprep.subr.bf16.mxu0 %v3014_v12 }
0x14d4   : > { %2847 = vmatprep.mubr.msk.f32.mxu0 %vm3015_vm1, %v3016_v15  ;;  %v2346_v15 = vld [vmem:[%s3568_s18 + $0x8] sm:$0xff] }
0x14d5   : > { %v2935_v38 = vpack.c.bf16 %v2346_v15, %v2345_v37 }
0x14d7   : > { %2936 = vmatpush3.bf16.msra.mxu0 %v2935_v38 }
0x14d8   : > { %2937 = vmatprep.subr.bf16.mxu0 %v3014_v12  ;;  %v2558_v12 = vld [vmem:[%s3566_s16] ss:$0 sm:$0xff] }
0x14db   : > { %2939 = vmatpush3.bf16.msra.mxu0 %v2938_v41 }
0x15a6   : > { %v2312_v30 = vpop.f32.mrb[24].mxu0 }
0x15a7   : > { %v2318_v31 = vsel %vm584_vm0, %v2312_v30, 0.0  ;;  %v2838_v32 = vpop.f32.mrb[25].mxu0 }
0x15a8   : > { %2319 = vadd.xlane.f32.xlu0 %v2318_v31 }
0x1635   : > { %v2320_v14 = vpop.xlane.xlu0 %2319 }
0x1636   : > { %v2321_v34 = vmul.f32 0.03125, %v2320_v14 }
0x1638   : > { %v2322_v25 = vsub.f32 %v2312_v30, %v2321_v34 }
0x163a   : > { %v2323_v35 = vmul.f32 %v2322_v25, %v2322_v25 }
0x163c   : > { %v2324_v36 = vsel %vm584_vm0, %v2323_v35, 0.0 }
0x163d   : > { %2325 = vadd.xlane.f32.xlu0 %v2324_v36 }
0x16ca   : > { %v2326_v42 = vpop.xlane.xlu0 %2325 }
0x16cb   : > { %v2327_v43 = vmul.f32 0.03125, %v2326_v42 }
0x16cd   : > { %v2328_v44 = vadd.f32 1e-05, %v2327_v43 }
0x16cf   : > { %2989 = vrsqrt.f32 %v2328_v44 }
0x16d9   : > { %v2990_v45 = vpop.eup %2989 }
0x16da   : > { %v2330_v46 = vmul.f32 %v2990_v45, %v2322_v25 }
0x16dc   : > { %v2337_v48 = vmul.f32 %v2558_v12, %v2330_v46 }
0x16de   : > { %v2344_v49 = vadd.f32 %v2559_v47, %v2337_v48 }
0x16e0   : > { %2848 = vmatmul.mubr.msk.f32.vlgmr.msra.gmra.mrb[26].mxu0 %vm584_vm0, %v2344_v49 }
0x17b3   : > { %v2418_v50 = vpop.f32.mrb[26].mxu0 }
0x17b4   : > { %2422 = vst [vmem:[%s577_s21] sm:$0xff] %v2418_v50  ;;  %v2849_v51 = vpop.f32.mrb[27].mxu0 }
0x17b5 PF: > { %s35_s22 = sadd.s32 1, %s3011_s22  }
0x17b6   : > { %p32_p9 = scmp.ge.s32.totalorder %s35_s22, 4  }
0x17b8   :  { %34 = sbr.rel (!%p32_p9) target bundleno = 23 (0x17), region = 134 }

</bundles_post_ra>
